<compile_context>
chip_gen: v7x
topology: tpu7x:2x2x1
jax: 0.10.0
libtpu: 0.0.40
codegen_flags: <defaults>
</compile_context>

<pallas_src>
import functools

import numpy as np
import jax
import jax.numpy as jnp
from jax import lax
from jax.experimental import pallas as pl
from jax.experimental.pallas import tpu as pltpu


# ---------------------------------------------------------------------------
# Fused cross-attention block + ner_span_affine epilogue (single pallas_call)
# ---------------------------------------------------------------------------

def _mha_affine_kernel(x_ref, img_ref, wq_ref, wkv_ref, *rest,
                       B, LQP, LKP, Lk, n_head, d_k, d_v, use_fc):
    if use_fc:
        fc_ref, g_ref, b_ref, aw_ref, ab_ref, o_ref = rest
    else:
        g_ref, b_ref, aw_ref, ab_ref, o_ref = rest
        fc_ref = None

    x = x_ref[...]                                    # (B*LQP, D) f32 residual
    x16 = x.astype(jnp.bfloat16)
    img16 = img_ref[...].astype(jnp.bfloat16)         # (B*LKP, D)

    # fused projections; 1/temperature is pre-folded into wq
    q = jnp.dot(x16, wq_ref[...], preferred_element_type=jnp.float32)       # (B*LQP, H*dk)
    kv = jnp.dot(img16, wkv_ref[...], preferred_element_type=jnp.float32)   # (B*LKP, H*(dk+dv))

    if LKP != Lk:   # static: mask padded key columns (only if Lk was padded)
        kmask = jnp.where(
            lax.broadcasted_iota(jnp.int32, (1, LKP), 1) < Lk,
            0.0, -1e9).astype(jnp.float32)
    else:
        kmask = None

    proj_rows = []
    for bi in range(B):                               # static batch loop
        qb = q[bi * LQP:(bi + 1) * LQP]
        kvb = kv[bi * LKP:(bi + 1) * LKP]
        proj_b = None
        for h in range(n_head):                       # static head loop
            qh = qb[:, h * d_k:(h + 1) * d_k].astype(jnp.bfloat16)
            kh = kvb[:, h * d_k:(h + 1) * d_k].astype(jnp.bfloat16)
            vh = kvb[:, n_head * d_k + h * d_v:
                        n_head * d_k + (h + 1) * d_v].astype(jnp.bfloat16)
            s = lax.dot_general(qh, kh, (((1,), (1,)), ((), ())),
                                preferred_element_type=jnp.float32)         # (LQP, LKP)
            if kmask is not None:
                s = s + kmask
            # softmax(dim=-1) in f32 (exact normalization)
            m = jnp.max(s, axis=-1, keepdims=True)
            e = jnp.exp(s - m)
            p = e / jnp.sum(e, axis=-1, keepdims=True)
            head = jnp.dot(p.astype(jnp.bfloat16), vh,
                           preferred_element_type=jnp.float32)              # (LQP, dv)
            if use_fc:
                contrib = jnp.dot(head.astype(jnp.bfloat16),
                                  fc_ref[h * d_v:(h + 1) * d_v, :],
                                  preferred_element_type=jnp.float32)       # (LQP, D)
            else:
                contrib = head                        # n_head == 1, d_v == d_model
            proj_b = contrib if proj_b is None else proj_b + contrib
        proj_rows.append(proj_b)
    proj = jnp.concatenate(proj_rows, axis=0)         # (B*LQP, D)

    # dropout -> identity (eval); residual + LayerNorm (f32), eps=1e-5
    y = proj + x
    mean = jnp.mean(y, axis=-1, keepdims=True)
    var = jnp.mean((y - mean) ** 2, axis=-1, keepdims=True)
    ln = (y - mean) * lax.rsqrt(var + 1e-5) * g_ref[...] + b_ref[...]

    # fused ner_span_affine (outputs lane-padded to 128; sliced outside)
    o_ref[...] = (jnp.dot(ln.astype(jnp.bfloat16), aw_ref[...],
                          preferred_element_type=jnp.float32) + ab_ref[...])


def mha_affine_block(prepared, q_in, kv_in):
    """q_in: (B, Lq, D), kv_in: (B, Lk, D).
    Returns affine(LN(attn(q_in, kv_in) + q_in)) lane-padded: (B, Lq, 128)."""
    mp = prepared["mha"]
    n_head, d_k, d_v = mp["n_head"], mp["d_k"], mp["d_v"]
    B, Lq, D = q_in.shape
    _, Lk, _ = kv_in.shape
    use_fc = mp["fc"] is not None

    # pad seq dims to a sublane multiple so all in-kernel row slices are aligned
    LQP = -(-Lq // 8) * 8
    LKP = -(-Lk // 8) * 8
    x = q_in.astype(jnp.float32)
    if LQP != Lq:
        x = jnp.pad(x, ((0, 0), (0, LQP - Lq), (0, 0)))
    img = kv_in.astype(jnp.float32)
    if LKP != Lk:
        img = jnp.pad(img, ((0, 0), (0, LKP - Lk), (0, 0)))
    x_flat = x.reshape(B * LQP, D)          # batch folded into M
    img_flat = img.reshape(B * LKP, D)

    kern = functools.partial(_mha_affine_kernel, B=B, LQP=LQP, LKP=LKP, Lk=Lk,
                             n_head=n_head, d_k=d_k, d_v=d_v, use_fc=use_fc)
    args = [x_flat, img_flat, mp["wq"], mp["wkv"]]
    if use_fc:
        args.append(mp["fc"])
    args += [mp["ln_g"], mp["ln_b"],
             prepared["affine_w_pad"], prepared["affine_b_pad"]]

    logits_pad = pl.pallas_call(
        kern,
        out_shape=jax.ShapeDtypeStruct((B * LQP, 128), jnp.float32),
        compiler_params=pltpu.CompilerParams(vmem_limit_bytes=32 * 1024 * 1024),
    )(*args)

    return logits_pad.reshape(B, LQP, 128)[:, :Lq, :]


# ---------------------------------------------------------------------------
# span_feature_generator: one un-padded matmul per distinct span width
# ---------------------------------------------------------------------------

def _span_group_kernel(x_ref, w_ref, b_ref, o_ref):
    o_ref[...] = (jnp.dot(x_ref[...].astype(jnp.bfloat16), w_ref[...],
                          preferred_element_type=jnp.float32) + b_ref[...])


def span_feature_generator(feature, span_start_np, span_end_np,
                           max_seq_length, span_params):
    B, L, D = feature.shape

    # host-side static span table (reference uses batch row 0 for all batches)
    spans = []      # (start, width) in original reference order
    for i in range(max_seq_length, span_start_np.shape[-1]):
        s = int(span_start_np[0, i])
        w = int(span_end_np[0, i]) - s
        if 1 <= w <= 5:
            spans.append((s, w))
    if not spans:
        return feature

    # group spans by width: one matmul per distinct width with the un-padded
    # ((w+1)*D, D) weight, all spans of that width (x batch) stacked along M.
    groups = {}
    for orig, (s, w) in enumerate(spans):
        groups.setdefault(w, []).append((orig, s))

    span_out = [None] * len(spans)
    for w, grp in sorted(groups.items()):
        n_w = len(grp)
        tok_idx = np.concatenate(
            [np.arange(s, s + w + 1, dtype=np.int32) for _, s in grp])
        gathered = jnp.take(feature, jnp.asarray(tok_idx), axis=1)   # (B, n_w*(w+1), D)
        lhs = gathered.reshape(B * n_w, (w + 1) * D)                 # lane-dense, no transpose
        w_bf16, b_f32 = span_params[w + 1]                           # ((w+1)*D, D) bf16, (1, D) f32
        out = pl.pallas_call(
            _span_group_kernel,
            out_shape=jax.ShapeDtypeStruct((B * n_w, D), jnp.float32),
            compiler_params=pltpu.CompilerParams(vmem_limit_bytes=32 * 1024 * 1024),
        )(lhs.astype(jnp.float32), w_bf16, b_f32)
        out = out.reshape(B, n_w, D)
        for j, (orig, _) in enumerate(grp):
            span_out[orig] = out[:, j:j + 1, :]

    return jnp.concatenate([feature] + span_out, axis=1)            # (B, L + n_spans, D)


# ---------------------------------------------------------------------------
# MSFMNER forward (eval branch)
# ---------------------------------------------------------------------------

def msfmner_forward(prepared, text_features, image_embeds,
                    span_token_level_mask_np, span_ner_labels,
                    span_start_np, span_end_np, max_seq_length):
    B, L, D = text_features.shape

    # span-augmented text features
    feat1 = span_feature_generator(
        text_features, span_start_np, span_end_np, max_seq_length,
        prepared["span"])                                            # (B, L_total, D)
    L_total = feat1.shape[1]

    # fused cross-attention block + ner_span_affine epilogue
    logits_pad = mha_affine_block(prepared, feat1, image_embeds)     # (B, L_total, 128)
    n_cls = prepared["n_cls"]
    flat_logits = logits_pad.reshape(B * L_total, 128)[:, :n_cls]    # (B*L_total, 5)

    # flatten_emb_by_token_level_span_mask (mask is a static host array)
    idx = np.nonzero(np.asarray(span_token_level_mask_np).reshape(-1))[0].astype(np.int32)
    idx_j = jnp.asarray(idx)
    ner_span_outputs = flat_logits[idx_j, :]
    span_ner_labels_masked = span_ner_labels.reshape(-1)[idx_j]
    return ner_span_outputs, span_ner_labels_masked


# ---------------------------------------------------------------------------
# deterministic parameter construction + one-time device-side preparation
# ---------------------------------------------------------------------------

def make_params(key, d_model=768, n_head=2):
    d_k = d_v = d_model
    ks = jax.random.split(key, 16)
    std_qk = np.sqrt(2.0 / (d_model + d_k))
    std_v = np.sqrt(2.0 / (d_model + d_v))
    std_fc = np.sqrt(2.0 / (n_head * d_v + d_model))    # xavier_normal_

    mha = {
        "n_head": n_head, "d_k": d_k, "d_v": d_v,
        "w_qs": std_qk * jax.random.normal(ks[0], (d_model, n_head * d_k), jnp.float32),
        "w_ks": std_qk * jax.random.normal(ks[1], (d_model, n_head * d_k), jnp.float32),
        "w_vs": std_v * jax.random.normal(ks[2], (d_model, n_head * d_v), jnp.float32),
        "ln_g": jnp.ones((d_model,), jnp.float32),
        "ln_b": jnp.zeros((d_model,), jnp.float32),
    }
    if n_head > 1:
        mha["fc"] = std_fc * jax.random.normal(
            ks[3], (n_head * d_v, d_model), jnp.float32)

    span = {}
    for n, kk in zip(range(2, 7), ks[4:9]):
        bound = 1.0 / np.sqrt(n * d_model)
        k_w, k_b = jax.random.split(kk)
        span[n] = (
            jax.random.uniform(k_w, (n * d_model, d_model), jnp.float32, -bound, bound),
            jax.random.uniform(k_b, (d_model,), jnp.float32, -bound, bound),
        )

    bound = 1.0 / np.sqrt(d_model)
    affine_w = jax.random.uniform(ks[9], (d_model, 5), jnp.float32, -bound, bound)
    affine_b = jax.random.uniform(ks[10], (5,), jnp.float32, -bound, bound)

    return {"mha": mha, "span": span, "affine_w": affine_w, "affine_b": affine_b}


def prepare_params(raw):
    """One-time weight prep: fold 1/temperature, concat k/v, cast to bf16,
    lane-pad the final affine.  Done once, not per forward call."""
    mha = raw["mha"]
    n_head, d_k, d_v = mha["n_head"], mha["d_k"], mha["d_v"]
    D = mha["w_qs"].shape[0]
    inv_temp = float(1.0 / np.sqrt(d_k))
    prepared_mha = {
        "n_head": n_head, "d_k": d_k, "d_v": d_v,
        "wq": (mha["w_qs"] * inv_temp).astype(jnp.bfloat16),               # (D, H*dk)
        "wkv": jnp.concatenate([mha["w_ks"], mha["w_vs"]],
                               axis=1).astype(jnp.bfloat16),               # (D, H*(dk+dv))
        "fc": mha["fc"].astype(jnp.bfloat16) if "fc" in mha else None,     # (H*dv, D)
        "ln_g": mha["ln_g"].reshape(1, D).astype(jnp.float32),
        "ln_b": mha["ln_b"].reshape(1, D).astype(jnp.float32),
    }
    span = {n: (w.astype(jnp.bfloat16), b.reshape(1, -1).astype(jnp.float32))
            for n, (w, b) in raw["span"].items()}

    aw, ab = raw["affine_w"], raw["affine_b"]
    K, n_out = aw.shape
    N_PAD = 128
    aw_pad = jnp.zeros((K, N_PAD), jnp.float32).at[:, :n_out].set(
        aw.astype(jnp.float32)).astype(jnp.bfloat16)
    ab_pad = jnp.zeros((1, N_PAD), jnp.float32).at[0, :n_out].set(
        ab.astype(jnp.float32))

    return {"mha": prepared_mha, "span": span,
            "affine_w_pad": aw_pad, "affine_b_pad": ab_pad, "n_cls": n_out}


# ---------------------------------------------------------------------------

if __name__ == "__main__":
    B = 2
    max_seq_length = 8       # args.max_seq_length
    L_img = 16               # image token count (ViT output, supplied as input)
    d_model = 768            # hard-coded in the module
    n_head = 2               # args.multi_head_num

    key = jax.random.PRNGKey(0)
    k_params, k_text, k_img = jax.random.split(key, 3)

    params = prepare_params(make_params(k_params, d_model=d_model, n_head=n_head))

    # stand-ins for BERT / ViT outputs (see TODO at top)
    text_features = 0.1 * jax.random.normal(
        k_text, (B, max_seq_length, d_model), jnp.float32)
    image_embeds = 0.1 * jax.random.normal(
        k_img, (B, L_img, d_model), jnp.float32)

    # static span table: first max_seq_length entries unused, then 5 spans
    # of widths (end-start) 1..5 -> exercises span_2 .. span_6
    n_spans = 5
    span_start = np.zeros((B, max_seq_length + n_spans), dtype=np.int32)
    span_end = np.zeros((B, max_seq_length + n_spans), dtype=np.int32)
    span_defs = [(0, 1), (2, 4), (1, 4), (3, 7), (0, 5)]
    for j, (s, e) in enumerate(span_defs):
        span_start[:, max_seq_length + j] = s
        span_end[:, max_seq_length + j] = e

    L_total = max_seq_length + n_spans  # 13
    # token-level span mask (static, deterministic): keep every other position
    span_token_level_mask = np.zeros((B, L_total), dtype=np.int32)
    span_token_level_mask[:, ::2] = 1

    # span ner labels in [0, 5)
    span_ner_labels = jnp.asarray(
        (np.arange(B * L_total).reshape(B, L_total) % 5).astype(np.int32))

    ner_span_outputs, span_ner_labels_masked = msfmner_forward(
        params, text_features, image_embeds,
        span_token_level_mask, span_ner_labels,
        span_start, span_end, max_seq_length)

    jax.block_until_ready(ner_span_outputs)
    jax.block_until_ready(span_ner_labels_masked)

    n_kept = int(span_token_level_mask.sum())
    assert ner_span_outputs.shape == (n_kept, 5)
    assert span_ner_labels_masked.shape == (n_kept,)
    assert bool(jnp.all(jnp.isfinite(ner_span_outputs)))

    print("KERNEL_OK")
</pallas_src>

<mosaic_0001>
module attributes {stable_mosaic.version = 11 : i64} {
  func.func @_span_group_kernel(%arg0: memref<2x1536xf32, #tpu.memory_space<vmem>>, %arg1: memref<1536x768xbf16, #tpu.memory_space<vmem>>, %arg2: memref<1x768xf32, #tpu.memory_space<vmem>>, %arg3: memref<2x768xf32, #tpu.memory_space<vmem>>) attributes {dimension_semantics = [], scalar_prefetch = 0 : i64, scratch_operands = 0 : i64, tpu.core_type = #tpu.core_type<tc>} {
    %c0 = arith.constant 0 : index
    %c0_0 = arith.constant 0 : index
    %0 = vector.load %arg0[%c0, %c0_0] : memref<2x1536xf32, #tpu.memory_space<vmem>>, vector<2x1536xf32>
    %1 = arith.truncf %0 : vector<2x1536xf32> to vector<2x1536xbf16>
    %c0_1 = arith.constant 0 : index
    %c0_2 = arith.constant 0 : index
    %2 = vector.load %arg1[%c0_1, %c0_2] : memref<1536x768xbf16, #tpu.memory_space<vmem>>, vector<1536x768xbf16>
    %cst = arith.constant dense<0.000000e+00> : vector<2x768xf32>
    %3 = tpu.matmul %1, %2, %cst {dimension_numbers = #tpu.dot_dimension_numbers<[1], [0], [0], [1], [0, 0, 1, 1], [], []>} : vector<2x1536xbf16>, vector<1536x768xbf16>, vector<2x768xf32> -> vector<2x768xf32>
    %c0_3 = arith.constant 0 : index
    %c0_4 = arith.constant 0 : index
    %4 = vector.load %arg2[%c0_3, %c0_4] : memref<1x768xf32, #tpu.memory_space<vmem>>, vector<1x768xf32>
    %5 = vector.broadcast %4 : vector<1x768xf32> to vector<2x768xf32>
    %6 = arith.addf %3, %5 : vector<2x768xf32>
    %c0_5 = arith.constant 0 : index
    %c0_6 = arith.constant 0 : index
    %7 = vector.load %arg3[%c0_5, %c0_6] : memref<2x768xf32, #tpu.memory_space<vmem>>, vector<2x768xf32>
    tpu.vector_store %arg3[%c0_5, %c0_6], %6 {strides = array<i32>} : memref<2x768xf32, #tpu.memory_space<vmem>>, vector<2x768xf32>,
    return
  }
}

</mosaic_0001>

<bundles_post_ra>
// kernel: tpu_custom_call.1
= control target key start
LH: loop header
LB: loop body
LE: loop exit
PB: predicated region body
PF: predicated region fallthrough
CT: control target
= control target key end

     0   :  { %8 = vsyncpa [#allocation3], 0  ;;  %s6224_s0 = inlined_call_operand.hbm [shape: f32[2,1536], index: 0, kind: input, shape index: {}]   ;;  %s6225_s1 = inlined_call_operand.hbm [shape: bf16[1536,768], index: 1, kind: input, shape index: {}]   ;;  %s6226_s2 = inlined_call_operand.hbm [shape: f32[1,768], index: 2, kind: input, shape index: {}]   ;;  %s6227_s3 = inlined_call_operand.hbm [shape: f32[2,768], index: 3, kind: output, shape index: {}]  }
   0x1   :  { %9 = vsyncpa [#allocation6], 0 }
   0x2   :  { %10 = vsyncpa [#allocation4], 0  ;;  %s6019_s12 = smov [#allocation5]   ;;  %s5925_s16 = scalar_lea.hbm %s6225_s1, 73728 }
   0x3   :  { %s26_s13 = sshll.u32 %s6019_s12, 4  ;;  %p5926_p0 = scmp.ne.s32.totalorder %s6225_s1, %s5925_s16  ;;  %s27_s13 = int_to_ptr.vmem [resolvable:$true] %s26_s13 }
   0x4   :  { %p5929_p1 = scmp.lt.u32.totalorder %s5925_s16, %s6225_s1 }
   0x6   :  { %p5931_p2 = pnand %p5929_p1, %p5926_p0 }
   0x8   :  { %5934 = shalt.err (!%p5931_p2)
}
   0x9   :  { %s5935_s21 = scalar_lea.vmem %s27_s13, 73728  ;;  %p5940_p4 = scmp.lt.s32.totalorder %s27_s13, %s27_s13 }
   0xa   :  { %p5936_p3 = scmp.ne.s32.totalorder %s27_s13, %s5935_s21  ;;  %p5941_p5 = scmp.lt.s32.totalorder %s5935_s21, %s5935_s21 }
   0xc   :  { %p5942_p6 = por %p5941_p5, %p5940_p4 }
   0xe   :  { %p5943_p7 = pnand %p5942_p6, %p5936_p3 }
  0x10   :  { %5946 = shalt.err (!%p5943_p7)
}
  0x11   :  { %s6020_s22 = smov 384   ;;  %s6021_s23 = smov 24  }
  0x12   :  { %32 = dma.hbm_to_vmem [thread:$0]  %s6225_s1, 73728, %s27_s13, [#allocation6], %s6020_s22, %s6020_s22, %s6021_s23  }
  0x13   :  { %s6022_s26 = smov [#allocation2]   ;;  %s6023_s28 = smov [#allocation7]  }
  0x14   :  { %s17_s27 = sshll.u32 %s6022_s26, 4  ;;  %s39_s29 = sshll.u32 %s6023_s28, 4  ;;  %s18_s27 = int_to_ptr.vmem [resolvable:$true] %s17_s27  ;;  %s40_s29 = int_to_ptr.vmem [resolvable:$true] %s39_s29 }
  0x15   :  { %s5947_s5 = scalar_lea.hbm %s6224_s0, 384 }
  0x16   :  { %p5948_p8 = scmp.ne.s32.totalorder %s6224_s0, %s5947_s5  ;;  %p5951_p9 = scmp.lt.u32.totalorder %s5947_s5, %s6224_s0 }
  0x18   :  { %p5953_p10 = pnand %p5951_p9, %p5948_p8 }
  0x1a   :  { %5956 = shalt.err (!%p5953_p10)
}
  0x1b   :  { %s5957_s1 = scalar_lea.vmem %s18_s27, 384  ;;  %p5962_p12 = scmp.lt.s32.totalorder %s18_s27, %s18_s27 }
  0x1c   :  { %p5958_p11 = scmp.ne.s32.totalorder %s18_s27, %s5957_s1  ;;  %p5963_p13 = scmp.lt.s32.totalorder %s5957_s1, %s5957_s1 }
  0x1e   :  { %p5964_p0 = por %p5963_p13, %p5962_p12 }
  0x20   :  { %p5965_p1 = pnand %p5964_p0, %p5958_p11 }
  0x22   :  { %5968 = shalt.err (!%p5965_p1)
}
  0x23   :  { %20 = dma.hbm_to_vmem [thread:$0]  %s6224_s0, 384, %s18_s27, [#allocation3]  }
  0x24   :  { %s5969_s14 = scalar_lea.hbm %s6226_s2, 96 }
  0x25   :  { %p5970_p2 = scmp.ne.s32.totalorder %s6226_s2, %s5969_s14  ;;  %p5973_p3 = scmp.lt.u32.totalorder %s5969_s14, %s6226_s2 }
  0x27   :  { %p5975_p4 = pnand %p5973_p3, %p5970_p2 }
  0x29   :  { %5978 = shalt.err (!%p5975_p4)
}
  0x2a   :  { %s5979_s19 = scalar_lea.vmem %s40_s29, 96  ;;  %p5984_p6 = scmp.lt.s32.totalorder %s40_s29, %s40_s29 }
  0x2b   :  { %p5980_p5 = scmp.ne.s32.totalorder %s40_s29, %s5979_s19  ;;  %p5985_p7 = scmp.lt.s32.totalorder %s5979_s19, %s5979_s19 }
  0x2d   :  { %p5986_p8 = por %p5985_p7, %p5984_p6 }
  0x2f   :  { %p5987_p9 = pnand %p5986_p8, %p5980_p5 }
  0x31   :  { %5990 = shalt.err (!%p5987_p9)
}
  0x32   :  { %42 = dma.hbm_to_vmem [thread:$0]  %s6226_s2, 96, %s40_s29, [#allocation6]  }
  0x33   :  { %6013 = dma.done.wait [#allocation3], 384  }
  0x34   :  { %6014 = vsyncadd [#allocation3], 4294966912 }
  0x35   :  { %6015 = dma.done.wait [#allocation6], 73824  }
  0x36   :  { %6016 = vsyncadd [#allocation6], 4294893472  ;;  %v5058_v0 = vld [vmem:[#allocation5 + $0x4] ss:$24 sps:$4 sm:$0xff]   ;;  %v5062_v2 = vld [vmem:[#allocation5] ss:$24 sps:$4 sm:$0xff]   ;;  %v62_v38 = vlaneseq }
  0x37   :  { %v5060_v1 = vld [vmem:[#allocation5 + $0x904] ss:$24 sps:$4 sm:$0xff]   ;;  %3621 = vmatprep.subr.bf16.mxu1 %v5058_v0  ;;  %v5063_v3 = vld [vmem:[#allocation5 + $0x900] ss:$24 sps:$4 sm:$0xff]   ;;  %v5064_v4 = vld [vmem:[#allocation5 + $0x34] ss:$24 sps:$4 sm:$0xff]  }
  0x38   :  { %3744 = vmatprep.subr.bf16.mxu0 %v5060_v1  ;;  %3622 = vmatpush1.bf16.msra.mxu1 %v5062_v2  ;;  %v5066_v5 = vld [vmem:[#allocation5 + $0x934] ss:$24 sps:$4 sm:$0xff]   ;;  %v5068_v6 = vld [vmem:[#allocation5 + $0x30] ss:$24 sps:$4 sm:$0xff]   ;;  %v5070_v8 = vld [vmem:[#allocation5 + $0x64] ss:$24 sps:$4 sm:$0xff]  }
  0x39   :  { %3745 = vmatpush1.bf16.msra.mxu0 %v5063_v3  ;;  %3623 = vmatprep.subr.bf16.mxu1 %v5064_v4  ;;  %v5069_v7 = vld [vmem:[#allocation5 + $0x930] ss:$24 sps:$4 sm:$0xff]   ;;  %v5072_v9 = vld [vmem:[#allocation5 + $0x964] ss:$24 sps:$4 sm:$0xff]   ;;  %v5074_v10 = vld [vmem:[#allocation5 + $0x60] ss:$24 sps:$4 sm:$0xff]  }
  0x3a   :  { %3746 = vmatprep.subr.bf16.mxu0 %v5066_v5  ;;  %v5075_v11 = vld [vmem:[#allocation5 + $0x960] ss:$24 sps:$4 sm:$0xff]   ;;  %v5076_v12 = vld [vmem:[#allocation5 + $0x94] ss:$24 sps:$4 sm:$0xff]   ;;  %v5080_v14 = vld [vmem:[#allocation5 + $0x90] ss:$24 sps:$4 sm:$0xff]  }
  0x3b   :  { %v5078_v13 = vld [vmem:[#allocation5 + $0x994] ss:$24 sps:$4 sm:$0xff]   ;;  %v5081_v15 = vld [vmem:[#allocation5 + $0x990] ss:$24 sps:$4 sm:$0xff]   ;;  %v5082_v16 = vld [vmem:[#allocation5 + $0xc4] ss:$24 sps:$4 sm:$0xff]  }
  0x3c   :  { %3624 = vmatpush1.bf16.msra.mxu1 %v5068_v6  ;;  %v5084_v17 = vld [vmem:[#allocation5 + $0x9c4] ss:$24 sps:$4 sm:$0xff]   ;;  %v5086_v18 = vld [vmem:[#allocation5 + $0xc0] ss:$24 sps:$4 sm:$0xff]   ;;  %v5088_v20 = vld [vmem:[#allocation5 + $0xf4] ss:$24 sps:$4 sm:$0xff]  }
  0x3d   :  { %3747 = vmatpush1.bf16.msra.mxu0 %v5069_v7  ;;  %3625 = vmatprep.subr.bf16.mxu1 %v5070_v8  ;;  %v5087_v19 = vld [vmem:[#allocation5 + $0x9c0] ss:$24 sps:$4 sm:$0xff]   ;;  %v5090_v21 = vld [vmem:[#allocation5 + $0x9f4] ss:$24 sps:$4 sm:$0xff]   ;;  %v5092_v22 = vld [vmem:[#allocation5 + $0xf0] ss:$24 sps:$4 sm:$0xff]  }
  0x3e   :  { %3748 = vmatprep.subr.bf16.mxu0 %v5072_v9  ;;  %v5093_v23 = vld [vmem:[#allocation5 + $0x9f0] ss:$24 sps:$4 sm:$0xff]   ;;  %v5094_v24 = vld [vmem:[#allocation5 + $0x124] ss:$24 sps:$4 sm:$0xff]   ;;  %v5098_v26 = vld [vmem:[#allocation5 + $0x120] ss:$24 sps:$4 sm:$0xff]  }
  0x3f   :  { %v5096_v25 = vld [vmem:[#allocation5 + $0xa24] ss:$24 sps:$4 sm:$0xff]   ;;  %v5099_v27 = vld [vmem:[#allocation5 + $0xa20] ss:$24 sps:$4 sm:$0xff]   ;;  %v5100_v28 = vld [vmem:[#allocation5 + $0x154] ss:$24 sps:$4 sm:$0xff]  }
  0x40   :  { %3626 = vmatpush1.bf16.msra.mxu1 %v5074_v10  ;;  %v5102_v29 = vld [vmem:[#allocation5 + $0xa54] ss:$24 sps:$4 sm:$0xff]   ;;  %v5104_v30 = vld [vmem:[#allocation5 + $0x150] ss:$24 sps:$4 sm:$0xff]   ;;  %v5106_v32 = vld [vmem:[#allocation5 + $0x184] ss:$24 sps:$4 sm:$0xff]  }
  0x41   :  { %3749 = vmatpush1.bf16.msra.mxu0 %v5075_v11  ;;  %3627 = vmatprep.subr.bf16.mxu1 %v5076_v12  ;;  %v5105_v31 = vld [vmem:[#allocation5 + $0xa50] ss:$24 sps:$4 sm:$0xff]   ;;  %v5108_v33 = vld [vmem:[#allocation5 + $0xa84] ss:$24 sps:$4 sm:$0xff]   ;;  %v5110_v34 = vld [vmem:[#allocation5 + $0x180] ss:$24 sps:$4 sm:$0xff]  }
  0x42   :  { %3750 = vmatprep.subr.bf16.mxu0 %v5078_v13  ;;  %v5111_v35 = vld [vmem:[#allocation5 + $0xa80] ss:$24 sps:$4 sm:$0xff]   ;;  %v6024_v36 = vmov 1983009808   ;;  %v5112_v39 = vld [vmem:[#allocation5 + $0x1b4] ss:$24 sps:$4 sm:$0xff]  }
  0x43   :  { %v60_v37 = vunpack.c.l.s4 %v6024_v36  ;;  %v5114_v40 = vld [vmem:[#allocation5 + $0xab4] ss:$24 sps:$4 sm:$0xff]   ;;  %v5116_v41 = vld [vmem:[#allocation5 + $0x1b0] ss:$24 sps:$4 sm:$0xff]   ;;  %v6082_v43 = vshrl.u32 %v62_v38, 7  ;;  %s6025_s2 = smov [#allocation8]  }
  0x44   :  { %3628 = vmatpush1.bf16.msra.mxu1 %v5080_v14  ;;  %v5117_v44 = vld [vmem:[#allocation5 + $0xab0] ss:$24 sps:$4 sm:$0xff]   ;;  %v5118_v45 = vld [vmem:[#allocation5 + $0x1e4] ss:$24 sps:$4 sm:$0xff]   ;;  %v5122_v47 = vld [vmem:[#allocation5 + $0x1e0] ss:$24 sps:$4 sm:$0xff]  }
  0x45   :  { %3751 = vmatpush1.bf16.msra.mxu0 %v5081_v15  ;;  %3629 = vmatprep.subr.bf16.mxu1 %v5082_v16  ;;  %v61_v42 = vunpack.c.0.s8 %v60_v37  ;;  %v5120_v46 = vld [vmem:[#allocation5 + $0xae4] ss:$24 sps:$4 sm:$0xff]   ;;  %v5123_v48 = vld [vmem:[#allocation5 + $0xae0] ss:$24 sps:$4 sm:$0xff]   ;;  %v5124_v50 = vld [vmem:[#allocation5 + $0x214] ss:$24 sps:$4 sm:$0xff]  }
  0x46   :  { %3752 = vmatprep.subr.bf16.mxu0 %v5084_v17  ;;  %v5126_v51 = vld [vmem:[#allocation5 + $0xb14] ss:$24 sps:$4 sm:$0xff]   ;;  %v5128_v53 = vld [vmem:[#allocation5 + $0x210] ss:$24 sps:$4 sm:$0xff]   ;;  %v5130_v57 = vld [vmem:[#allocation5 + $0x244] ss:$24 sps:$4 sm:$0xff]  }
  0x47   :  { %v6085_v49 = vsub.s32 %v61_v42, %v6082_v43  ;;  %v52_v52 = vld [vmem:[#allocation2] sm:$0xff]  ;;  %v6088_v56 = vld [vmem:[#allocation2 + $0x8] sm:$0xff]  ;;  %v5132_v58 = vld [vmem:[#allocation5 + $0xb44] ss:$24 sps:$4 sm:$0xff]   ;;  %s4400_s21 = sshll.u32 %s6025_s2, 4  ;;  %s4401_s21 = int_to_ptr.vmem [resolvable:$true] %s4400_s21 }
  0x48   :  { %3630 = vmatpush1.bf16.msra.mxu1 %v5086_v18  ;;  %v5129_v55 = vld [vmem:[#allocation5 + $0xb10] ss:$24 sps:$4 sm:$0xff]   ;;  %v75_v60 = vcombine.high %v6088_v56, %v6088_v56  ;;  %v5134_v63 = vld [vmem:[#allocation5 + $0x240] ss:$24 sps:$4 sm:$0xff]   ;;  %v5136_v1 = vld [vmem:[#allocation5 + $0x274] ss:$24 sps:$4 sm:$0xff]   ;;  %v58_v9 = vcombine.high %v52_v52, %v52_v52  ;;  %p5996_p11 = scmp.lt.s32.totalorder %s4401_s21, %s4401_s21 }
  0x49   :  { %3753 = vmatpush1.bf16.msra.mxu0 %v5087_v19  ;;  %3631 = vmatprep.subr.bf16.mxu1 %v5088_v20  ;;  %v65_v54 = vrot.slane %v52_v52, %v6085_v49  ;;  %v5135_v0 = vld [vmem:[#allocation5 + $0xb40] ss:$24 sps:$4 sm:$0xff]   ;;  %v5138_v2 = vld [vmem:[#allocation5 + $0xb74] ss:$24 sps:$4 sm:$0xff]   ;;  %v5140_v5 = vld [vmem:[#allocation5 + $0x270] ss:$24 sps:$4 sm:$0xff]  }
  0x4a   :  { %3754 = vmatprep.subr.bf16.mxu0 %v5090_v21  ;;  %v89_v62 = vrot.slane %v75_v60, %v6085_v49  ;;  %v5141_v6 = vld [vmem:[#allocation5 + $0xb70] ss:$24 sps:$4 sm:$0xff]   ;;  %v5142_v7 = vld [vmem:[#allocation5 + $0x2a4] ss:$24 sps:$4 sm:$0xff]   ;;  %v5146_v10 = vld [vmem:[#allocation5 + $0x2a0] ss:$24 sps:$4 sm:$0xff]   ;;  %v6100_v14 = vrot.slane %v58_v9, %v6085_v49 }
  0x4b   :  { %v73_v59 = vcombine.high %v65_v54, %v65_v54  ;;  %v5144_v8 = vld [vmem:[#allocation5 + $0xba4] ss:$24 sps:$4 sm:$0xff]   ;;  %v5147_v11 = vld [vmem:[#allocation5 + $0xba0] ss:$24 sps:$4 sm:$0xff]   ;;  %v5148_v12 = vld [vmem:[#allocation5 + $0x2d4] ss:$24 sps:$4 sm:$0xff]   ;;  %v6104_v20 = vpack.c.bf16 %v65_v54, %v65_v54 }
  0x4c   :  { %3632 = vmatpush1.bf16.msra.mxu1 %v5092_v22  ;;  %v91_v3 = vcombine.high %v89_v62, %v89_v62  ;;  %v5150_v13 = vld [vmem:[#allocation5 + $0xbd4] ss:$24 sps:$4 sm:$0xff]   ;;  %v5152_v15 = vld [vmem:[#allocation5 + $0x2d0] ss:$24 sps:$4 sm:$0xff]   ;;  %v5156_v17 = vld [vmem:[#allocation5 + $0x304] ss:$24 sps:$4 sm:$0xff]   ;;  %v74_v19 = vcombine.high %v6100_v14, %v6100_v14  ;;  %v6106_v21 = vpack.c.bf16 %v89_v62, %v89_v62 }
  0x4d   :  { %3755 = vmatpush1.bf16.msra.mxu0 %v5093_v23  ;;  %3633 = vmatprep.subr.bf16.mxu1 %v5094_v24  ;;  %v6092_v61 = vpack.c.bf16 %v73_v59, %v73_v59  ;;  %v5153_v16 = vld [vmem:[#allocation5 + $0xbd0] ss:$24 sps:$4 sm:$0xff]   ;;  %v5160_v18 = vld [vmem:[#allocation5 + $0xc04] ss:$24 sps:$4 sm:$0xff]   ;;  %v5154_v22 = vld [vmem:[#allocation5 + $0x300] ss:$24 sps:$4 sm:$0xff]  }
  0x4e   :  { %3756 = vmatprep.subr.bf16.mxu0 %v5096_v25  ;;  %v6096_v4 = vpack.c.bf16 %v91_v3, %v91_v3  ;;  %v5158_v23 = vld [vmem:[#allocation5 + $0xc00] ss:$24 sps:$4 sm:$0xff]   ;;  %v5163_v24 = vld [vmem:[#allocation5 + $0x334] ss:$24 sps:$4 sm:$0xff]   ;;  %v5176_v36 = vld [vmem:[#allocation5 + $0xc90] ss:$24 sps:$4 sm:$0xff]  }
  0x4f   :  { %3653 = vmatprep.mubr.bf16.mxu1 %v6092_v61  ;;  %v5166_v25 = vld [vmem:[#allocation5 + $0xc34] ss:$24 sps:$4 sm:$0xff]   ;;  %v5181_v37 = vld [vmem:[#allocation5 + $0x3c4] ss:$24 sps:$4 sm:$0xff]   ;;  %v5209_v3 = vld [vmem:[#allocation5 + $0x4b0] ss:$24 sps:$4 sm:$0xff]  }
  0x50   :  { %3634 = vmatpush1.bf16.msra.mxu1 %v5098_v26  ;;  %3776 = vmatprep.mubr.bf16.mxu0 %v6096_v4  ;;  %v6108_v26 = vpack.c.bf16 %v74_v19, %v74_v19  ;;  %v5184_v38 = vld [vmem:[#allocation5 + $0xcc4] ss:$24 sps:$4 sm:$0xff]   ;;  %v5190_v42 = vld [vmem:[#allocation5 + $0xcf4] ss:$24 sps:$4 sm:$0xff]   ;;  %v5218_v9 = vld [vmem:[#allocation5 + $0xde0] ss:$24 sps:$4 sm:$0xff]  }
  0x51   :  { %3757 = vmatpush1.bf16.msra.mxu0 %v5099_v27  ;;  %3635 = vmatprep.subr.bf16.mxu1 %v5100_v28  ;;  %v5161_v27 = vld [vmem:[#allocation5 + $0x330] ss:$24 sps:$4 sm:$0xff]   ;;  %v5199_v52 = vld [vmem:[#allocation5 + $0x454] ss:$24 sps:$4 sm:$0xff]   ;;  %v5205_v59 = vld [vmem:[#allocation5 + $0x484] ss:$24 sps:$4 sm:$0xff]  }
  0x52   :  { %3758 = vmatprep.subr.bf16.mxu0 %v5102_v29  ;;  %v5164_v28 = vld [vmem:[#allocation5 + $0xc30] ss:$24 sps:$4 sm:$0xff]   ;;  %v5169_v29 = vld [vmem:[#allocation5 + $0x364] ss:$24 sps:$4 sm:$0xff]   ;;  %v5202_v54 = vld [vmem:[#allocation5 + $0xd54] ss:$24 sps:$4 sm:$0xff]  }
  0x53   :  { %v5208_v62 = vld [vmem:[#allocation5 + $0xd84] ss:$24 sps:$4 sm:$0xff]   ;;  %v5235_v19 = vld [vmem:[#allocation5 + $0x574] ss:$24 sps:$4 sm:$0xff]   ;;  %s5991_s22 = scalar_lea.vmem %s4401_s21, 192 }
  0x54   :  { %3636 = vmatpush1.bf16.msra.mxu1 %v5104_v30  ;;  %v5172_v30 = vld [vmem:[#allocation5 + $0xc64] ss:$24 sps:$4 sm:$0xff]   ;;  %p5992_p10 = scmp.ne.s32.totalorder %s4401_s21, %s5991_s22  ;;  %p5997_p12 = scmp.lt.s32.totalorder %s5991_s22, %s5991_s22 }
  0x55   :  { %3759 = vmatpush1.bf16.msra.mxu0 %v5105_v31  ;;  %3637 = vmatprep.subr.bf16.mxu1 %v5106_v32  ;;  %v5167_v31 = vld [vmem:[#allocation5 + $0x360] ss:$24 sps:$4 sm:$0xff]  }
  0x56   :  { %3760 = vmatprep.subr.bf16.mxu0 %v5108_v33  ;;  %v5170_v32 = vld [vmem:[#allocation5 + $0xc60] ss:$24 sps:$4 sm:$0xff]   ;;  %v5175_v33 = vld [vmem:[#allocation5 + $0x394] ss:$24 sps:$4 sm:$0xff]   ;;  %p5998_p13 = por %p5997_p12, %p5996_p11 }
  0x58   :  { %3638 = vmatpush1.bf16.msra.mxu1 %v5110_v34  ;;  %v5178_v34 = vld [vmem:[#allocation5 + $0xc94] ss:$24 sps:$4 sm:$0xff]   ;;  %p5999_p0 = pnand %p5998_p13, %p5992_p10 }
  0x59   :  { %3761 = vmatpush1.bf16.msra.mxu0 %v5111_v35  ;;  %3639 = vmatprep.subr.bf16.mxu1 %v5112_v39  ;;  %v5173_v35 = vld [vmem:[#allocation5 + $0x390] ss:$24 sps:$4 sm:$0xff]   ;;  %v5179_v39 = vld [vmem:[#allocation5 + $0x3c0] ss:$24 sps:$4 sm:$0xff]  }
  0x5a   :  { %3762 = vmatprep.subr.bf16.mxu0 %v5114_v40  ;;  %v5182_v40 = vld [vmem:[#allocation5 + $0xcc0] ss:$24 sps:$4 sm:$0xff]  }
  0x5c   :  { %3640 = vmatpush1.bf16.msra.mxu1 %v5116_v41  ;;  %v5187_v41 = vld [vmem:[#allocation5 + $0x3f4] ss:$24 sps:$4 sm:$0xff]  }
  0x5d   :  { %3763 = vmatpush1.bf16.msra.mxu0 %v5117_v44  ;;  %3641 = vmatprep.subr.bf16.mxu1 %v5118_v45  ;;  %v5185_v44 = vld [vmem:[#allocation5 + $0x3f0] ss:$24 sps:$4 sm:$0xff]  }
  0x5e   :  { %3764 = vmatprep.subr.bf16.mxu0 %v5120_v46  ;;  %v5188_v45 = vld [vmem:[#allocation5 + $0xcf0] ss:$24 sps:$4 sm:$0xff]   ;;  %v5193_v46 = vld [vmem:[#allocation5 + $0x424] ss:$24 sps:$4 sm:$0xff]  }
  0x60   :  { %3642 = vmatpush1.bf16.msra.mxu1 %v5122_v47  ;;  %v5196_v47 = vld [vmem:[#allocation5 + $0xd24] ss:$24 sps:$4 sm:$0xff]  }
  0x61   :  { %3765 = vmatpush1.bf16.msra.mxu0 %v5123_v48  ;;  %3643 = vmatprep.subr.bf16.mxu1 %v5124_v50  ;;  %v5191_v48 = vld [vmem:[#allocation5 + $0x420] ss:$24 sps:$4 sm:$0xff]  }
  0x62   :  { %3766 = vmatprep.subr.bf16.mxu0 %v5126_v51  ;;  %v6113_v50 = vld [vmem:[#allocation2 + $0x10] sm:$0xff] }
  0x63   :  { %v5194_v51 = vld [vmem:[#allocation5 + $0xd20] ss:$24 sps:$4 sm:$0xff]  }
  0x64   :  { %3644 = vmatpush1.bf16.msra.mxu1 %v5128_v53  ;;  %v6117_v53 = vrot.slane %v6113_v50, %v6085_v49 }
  0x65   :  { %3767 = vmatpush1.bf16.msra.mxu0 %v5129_v55  ;;  %3645 = vmatprep.subr.bf16.mxu1 %v5130_v57  ;;  %v5197_v57 = vld [vmem:[#allocation5 + $0x450] ss:$24 sps:$4 sm:$0xff]  }
  0x66   :  { %3768 = vmatprep.subr.bf16.mxu0 %v5132_v58  ;;  %v107_v55 = vcombine.high %v6117_v53, %v6117_v53  ;;  %v5200_v58 = vld [vmem:[#allocation5 + $0xd50] ss:$24 sps:$4 sm:$0xff]  }
  0x68   :  { %3646 = vmatpush1.bf16.msra.mxu1 %v5134_v63  ;;  %v6121_v60 = vpack.c.bf16 %v107_v55, %v107_v55  ;;  %v5203_v63 = vld [vmem:[#allocation5 + $0x480] ss:$24 sps:$4 sm:$0xff]   ;;  %v5272_v55 = vld [vmem:[#allocation5 + $0x694] ss:$24 sps:$4 sm:$0xff]  }
  0x69   :  { %3769 = vmatpush1.bf16.msra.mxu0 %v5135_v0  ;;  %3647 = vmatprep.subr.bf16.mxu1 %v5136_v1  ;;  %v5206_v0 = vld [vmem:[#allocation5 + $0xd80] ss:$24 sps:$4 sm:$0xff]   ;;  %v5211_v1 = vld [vmem:[#allocation5 + $0x4b4] ss:$24 sps:$4 sm:$0xff]  }
  0x6a   :  { %3770 = vmatprep.subr.bf16.mxu0 %v5138_v2  ;;  %v5214_v2 = vld [vmem:[#allocation5 + $0xdb4] ss:$24 sps:$4 sm:$0xff]  }
  0x6c   :  { %3648 = vmatpush1.bf16.msra.mxu1 %v5140_v5  ;;  %v5212_v5 = vld [vmem:[#allocation5 + $0xdb0] ss:$24 sps:$4 sm:$0xff]  }
  0x6d   :  { %3771 = vmatpush1.bf16.msra.mxu0 %v5141_v6  ;;  %3649 = vmatprep.subr.bf16.mxu1 %v5142_v7  ;;  %v5217_v6 = vld [vmem:[#allocation5 + $0x4e4] ss:$24 sps:$4 sm:$0xff]  }
  0x6e   :  { %3772 = vmatprep.subr.bf16.mxu0 %v5144_v8  ;;  %v5220_v7 = vld [vmem:[#allocation5 + $0xde4] ss:$24 sps:$4 sm:$0xff]   ;;  %v5215_v8 = vld [vmem:[#allocation5 + $0x4e0] ss:$24 sps:$4 sm:$0xff]  }
  0x70   :  { %3650 = vmatpush1.bf16.msra.mxu1 %v5146_v10  ;;  %v5223_v10 = vld [vmem:[#allocation5 + $0x514] ss:$24 sps:$4 sm:$0xff]  }
  0x71   :  { %3773 = vmatpush1.bf16.msra.mxu0 %v5147_v11  ;;  %3651 = vmatprep.subr.bf16.mxu1 %v5148_v12  ;;  %v5226_v11 = vld [vmem:[#allocation5 + $0xe14] ss:$24 sps:$4 sm:$0xff]   ;;  %v5221_v12 = vld [vmem:[#allocation5 + $0x510] ss:$24 sps:$4 sm:$0xff]  }
  0x72   :  { %3774 = vmatprep.subr.bf16.mxu0 %v5150_v13  ;;  %v5224_v13 = vld [vmem:[#allocation5 + $0xe10] ss:$24 sps:$4 sm:$0xff]  }
  0x74   :  { %3652 = vmatpush1.bf16.msra.mxu1 %v5152_v15  ;;  %v5229_v15 = vld [vmem:[#allocation5 + $0x544] ss:$24 sps:$4 sm:$0xff]  }
  0x75   :  { %3775 = vmatpush1.bf16.msra.mxu0 %v5153_v16  ;;  %3662 = vmatprep.subr.bf16.mxu1 %v5156_v17  ;;  %v5232_v16 = vld [vmem:[#allocation5 + $0xe44] ss:$24 sps:$4 sm:$0xff]   ;;  %v5227_v17 = vld [vmem:[#allocation5 + $0x540] ss:$24 sps:$4 sm:$0xff]  }
  0x76   :  { %3785 = vmatprep.subr.bf16.mxu0 %v5160_v18  ;;  %v5230_v18 = vld [vmem:[#allocation5 + $0xe40] ss:$24 sps:$4 sm:$0xff]  }
  0x77   :  { %3654 = vmatmul.mubr.bf16.vlgmr.msra.gmra.mrb[0].mxu1 %v6104_v20 }
  0x78   :  { %3777 = vmatmul.mubr.bf16.vlgmr.msra.gmra.mrb[0].mxu0 %v6106_v21  ;;  %3663 = vmatpush1.bf16.msra.mxu1 %v5154_v22  ;;  %v5238_v22 = vld [vmem:[#allocation5 + $0xe74] ss:$24 sps:$4 sm:$0xff]  }
  0x79   :  { %3786 = vmatpush1.bf16.msra.mxu0 %v5158_v23  ;;  %3664 = vmatprep.subr.bf16.mxu1 %v5163_v24  ;;  %v5233_v23 = vld [vmem:[#allocation5 + $0x570] ss:$24 sps:$4 sm:$0xff]  }
  0x7a   :  { %3787 = vmatprep.subr.bf16.mxu0 %v5166_v25  ;;  %3694 = vmatprep.mubr.bf16.mxu1 %v6108_v26  ;;  %v5236_v24 = vld [vmem:[#allocation5 + $0xe70] ss:$24 sps:$4 sm:$0xff]   ;;  %v5241_v25 = vld [vmem:[#allocation5 + $0x5a4] ss:$24 sps:$4 sm:$0xff]  }
  0x7b   :  { %3817 = vmatprep.mubr.bf16.mxu0 %v6121_v60 }
  0x7c   :  { %3665 = vmatpush1.bf16.msra.mxu1 %v5161_v27  ;;  %v5244_v27 = vld [vmem:[#allocation5 + $0xea4] ss:$24 sps:$4 sm:$0xff]  }
  0x7d   :  { %3788 = vmatpush1.bf16.msra.mxu0 %v5164_v28  ;;  %3666 = vmatprep.subr.bf16.mxu1 %v5169_v29  ;;  %v92_v28 = vcombine.high %v6113_v50, %v6113_v50  ;;  %v5239_v29 = vld [vmem:[#allocation5 + $0x5a0] ss:$24 sps:$4 sm:$0xff]   ;;  %v5261_v50 = vld [vmem:[#allocation5 + $0xf30] ss:$24 sps:$4 sm:$0xff]  }
  0x7e   :  { %3789 = vmatprep.subr.bf16.mxu0 %v5172_v30  ;;  %v5242_v30 = vld [vmem:[#allocation5 + $0xea0] ss:$24 sps:$4 sm:$0xff]  }
  0x80   :  { %3667 = vmatpush1.bf16.msra.mxu1 %v5167_v31  ;;  %v5247_v31 = vld [vmem:[#allocation5 + $0x5d4] ss:$24 sps:$4 sm:$0xff]  }
  0x81   :  { %3790 = vmatpush1.bf16.msra.mxu0 %v5170_v32  ;;  %3668 = vmatprep.subr.bf16.mxu1 %v5175_v33  ;;  %v5250_v32 = vld [vmem:[#allocation5 + $0xed4] ss:$24 sps:$4 sm:$0xff]   ;;  %v6128_v33 = vrot.slane %v6088_v56, %v6085_v49  ;;  %v6139_v56 = vpack.c.bf16 %v6100_v14, %v6100_v14  ;;  %v5258_v14 = vld [vmem:[#allocation5 + $0x630] ss:$24 sps:$4 sm:$0xff]  }
  0x82   :  { %3791 = vmatprep.subr.bf16.mxu0 %v5178_v34  ;;  %v6131_v34 = vrot.slane %v92_v28, %v6085_v49  ;;  %v5317_v28 = vld [vmem:[#allocation5 + $0x10e4] ss:$24 sps:$4 sm:$0xff]  }
  0x84   :  { %3669 = vmatpush1.bf16.msra.mxu1 %v5173_v35  ;;  %v5245_v35 = vld [vmem:[#allocation5 + $0x5d0] ss:$24 sps:$4 sm:$0xff]  }
  0x85   :  { %3792 = vmatpush1.bf16.msra.mxu0 %v5176_v36  ;;  %3670 = vmatprep.subr.bf16.mxu1 %v5181_v37  ;;  %v5248_v36 = vld [vmem:[#allocation5 + $0xed0] ss:$24 sps:$4 sm:$0xff]   ;;  %v5254_v37 = vld [vmem:[#allocation5 + $0x604] ss:$24 sps:$4 sm:$0xff]  }
  0x86   :  { %3793 = vmatprep.subr.bf16.mxu0 %v5184_v38  ;;  %v5257_v38 = vld [vmem:[#allocation5 + $0xf04] ss:$24 sps:$4 sm:$0xff]  }
  0x88   :  { %3671 = vmatpush1.bf16.msra.mxu1 %v5179_v39  ;;  %v90_v39 = vcombine.high %v6128_v33, %v6128_v33 }
  0x89   :  { %3794 = vmatpush1.bf16.msra.mxu0 %v5182_v40  ;;  %3672 = vmatprep.subr.bf16.mxu1 %v5187_v41  ;;  %v108_v40 = vcombine.high %v6131_v34, %v6131_v34  ;;  %v5252_v41 = vld [vmem:[#allocation5 + $0x600] ss:$24 sps:$4 sm:$0xff]  }
  0x8a   :  { %3795 = vmatprep.subr.bf16.mxu0 %v5190_v42  ;;  %v6143_v42 = vpack.c.bf16 %v6117_v53, %v6117_v53  ;;  %v5264_v53 = vld [vmem:[#allocation5 + $0x660] ss:$24 sps:$4 sm:$0xff]  }
  0x8c   :  { %3673 = vmatpush1.bf16.msra.mxu1 %v5185_v44  ;;  %v5255_v44 = vld [vmem:[#allocation5 + $0xf00] ss:$24 sps:$4 sm:$0xff]  }
  0x8d   :  { %3796 = vmatpush1.bf16.msra.mxu0 %v5188_v45  ;;  %3674 = vmatprep.subr.bf16.mxu1 %v5193_v46  ;;  %v5260_v45 = vld [vmem:[#allocation5 + $0x634] ss:$24 sps:$4 sm:$0xff]  }
  0x8e   :  { %3797 = vmatprep.subr.bf16.mxu0 %v5196_v47  ;;  %v5263_v46 = vld [vmem:[#allocation5 + $0xf34] ss:$24 sps:$4 sm:$0xff]   ;;  %v6145_v47 = vpack.c.bf16 %v90_v39, %v90_v39  ;;  %v5324_v39 = vld [vmem:[#allocation5 + $0x840] ss:$24 sps:$4 sm:$0xff]  }
  0x90   :  { %3675 = vmatpush1.bf16.msra.mxu1 %v5191_v48  ;;  %v6147_v48 = vpack.c.bf16 %v108_v40, %v108_v40  ;;  %v5327_v40 = vld [vmem:[#allocation5 + $0x1140] ss:$24 sps:$4 sm:$0xff]  }
  0x91   :  { %3798 = vmatpush1.bf16.msra.mxu0 %v5194_v51  ;;  %3676 = vmatprep.subr.bf16.mxu1 %v5199_v52  ;;  %v5266_v51 = vld [vmem:[#allocation5 + $0x664] ss:$24 sps:$4 sm:$0xff]  }
  0x92   :  { %3799 = vmatprep.subr.bf16.mxu0 %v5202_v54  ;;  %v5269_v52 = vld [vmem:[#allocation5 + $0xf64] ss:$24 sps:$4 sm:$0xff]   ;;  %v5267_v54 = vld [vmem:[#allocation5 + $0xf60] ss:$24 sps:$4 sm:$0xff]  }
  0x94   :  { %3677 = vmatpush1.bf16.msra.mxu1 %v5197_v57  ;;  %v5275_v57 = vld [vmem:[#allocation5 + $0xf94] ss:$24 sps:$4 sm:$0xff]  }
  0x95   :  { %3800 = vmatpush1.bf16.msra.mxu0 %v5200_v58  ;;  %3678 = vmatprep.subr.bf16.mxu1 %v5205_v59  ;;  %v5270_v58 = vld [vmem:[#allocation5 + $0x690] ss:$24 sps:$4 sm:$0xff]  }
  0x96   :  { %3801 = vmatprep.subr.bf16.mxu0 %v5208_v62  ;;  %v5273_v59 = vld [vmem:[#allocation5 + $0xf90] ss:$24 sps:$4 sm:$0xff]   ;;  %v5278_v62 = vld [vmem:[#allocation5 + $0x6c4] ss:$24 sps:$4 sm:$0xff]  }
  0x98   :  { %3679 = vmatpush1.bf16.msra.mxu1 %v5203_v63  ;;  %v5281_v63 = vld [vmem:[#allocation5 + $0xfc4] ss:$24 sps:$4 sm:$0xff]  }
  0x99   :  { %3802 = vmatpush1.bf16.msra.mxu0 %v5206_v0  ;;  %3680 = vmatprep.subr.bf16.mxu1 %v5211_v1  ;;  %v5276_v0 = vld [vmem:[#allocation5 + $0x6c0] ss:$24 sps:$4 sm:$0xff]  }
  0x9a   :  { %3803 = vmatprep.subr.bf16.mxu0 %v5214_v2  ;;  %v5279_v1 = vld [vmem:[#allocation5 + $0xfc0] ss:$24 sps:$4 sm:$0xff]   ;;  %v5284_v2 = vld [vmem:[#allocation5 + $0x6f4] ss:$24 sps:$4 sm:$0xff]  }
  0x9c   :  { %3681 = vmatpush1.bf16.msra.mxu1 %v5209_v3  ;;  %v5287_v3 = vld [vmem:[#allocation5 + $0xff4] ss:$24 sps:$4 sm:$0xff]  }
  0x9d   :  { %3804 = vmatpush1.bf16.msra.mxu0 %v5212_v5  ;;  %3682 = vmatprep.subr.bf16.mxu1 %v5217_v6  ;;  %v5282_v5 = vld [vmem:[#allocation5 + $0x6f0] ss:$24 sps:$4 sm:$0xff]  }
  0x9e   :  { %3805 = vmatprep.subr.bf16.mxu0 %v5220_v7  ;;  %v5285_v6 = vld [vmem:[#allocation5 + $0xff0] ss:$24 sps:$4 sm:$0xff]   ;;  %v5290_v7 = vld [vmem:[#allocation5 + $0x724] ss:$24 sps:$4 sm:$0xff]  }
  0xa0   :  { %3683 = vmatpush1.bf16.msra.mxu1 %v5215_v8  ;;  %v5293_v8 = vld [vmem:[#allocation5 + $0x1024] ss:$24 sps:$4 sm:$0xff]  }
  0xa1   :  { %3806 = vmatpush1.bf16.msra.mxu0 %v5218_v9  ;;  %3684 = vmatprep.subr.bf16.mxu1 %v5223_v10  ;;  %v5288_v9 = vld [vmem:[#allocation5 + $0x720] ss:$24 sps:$4 sm:$0xff]  }
  0xa2   :  { %3807 = vmatprep.subr.bf16.mxu0 %v5226_v11  ;;  %v5291_v10 = vld [vmem:[#allocation5 + $0x1020] ss:$24 sps:$4 sm:$0xff]   ;;  %v5296_v11 = vld [vmem:[#allocation5 + $0x754] ss:$24 sps:$4 sm:$0xff]  }
  0xa4   :  { %3685 = vmatpush1.bf16.msra.mxu1 %v5221_v12  ;;  %v5299_v12 = vld [vmem:[#allocation5 + $0x1054] ss:$24 sps:$4 sm:$0xff]  }
  0xa5   :  { %3808 = vmatpush1.bf16.msra.mxu0 %v5224_v13  ;;  %3686 = vmatprep.subr.bf16.mxu1 %v5229_v15  ;;  %v5294_v13 = vld [vmem:[#allocation5 + $0x750] ss:$24 sps:$4 sm:$0xff]  }
  0xa6   :  { %3809 = vmatprep.subr.bf16.mxu0 %v5232_v16  ;;  %v5297_v15 = vld [vmem:[#allocation5 + $0x1050] ss:$24 sps:$4 sm:$0xff]   ;;  %v5302_v16 = vld [vmem:[#allocation5 + $0x784] ss:$24 sps:$4 sm:$0xff]  }
  0xa8   :  { %3687 = vmatpush1.bf16.msra.mxu1 %v5227_v17  ;;  %v5305_v17 = vld [vmem:[#allocation5 + $0x1084] ss:$24 sps:$4 sm:$0xff]  }
  0xa9   :  { %3810 = vmatpush1.bf16.msra.mxu0 %v5230_v18  ;;  %3688 = vmatprep.subr.bf16.mxu1 %v5235_v19  ;;  %v5300_v18 = vld [vmem:[#allocation5 + $0x780] ss:$24 sps:$4 sm:$0xff]  }
  0xaa   :  { %3811 = vmatprep.subr.bf16.mxu0 %v5238_v22  ;;  %v5303_v19 = vld [vmem:[#allocation5 + $0x1080] ss:$24 sps:$4 sm:$0xff]   ;;  %v5308_v22 = vld [vmem:[#allocation5 + $0x7b4] ss:$24 sps:$4 sm:$0xff]  }
  0xac   :  { %3689 = vmatpush1.bf16.msra.mxu1 %v5233_v23  ;;  %v5311_v23 = vld [vmem:[#allocation5 + $0x10b4] ss:$24 sps:$4 sm:$0xff]  }
  0xad   :  { %3812 = vmatpush1.bf16.msra.mxu0 %v5236_v24  ;;  %3690 = vmatprep.subr.bf16.mxu1 %v5241_v25  ;;  %v5306_v24 = vld [vmem:[#allocation5 + $0x7b0] ss:$24 sps:$4 sm:$0xff]  }
  0xae   :  { %3813 = vmatprep.subr.bf16.mxu0 %v5244_v27  ;;  %v5309_v25 = vld [vmem:[#allocation5 + $0x10b0] ss:$24 sps:$4 sm:$0xff]   ;;  %v5314_v27 = vld [vmem:[#allocation5 + $0x7e4] ss:$24 sps:$4 sm:$0xff]  }
  0xb0   :  { %3691 = vmatpush1.bf16.msra.mxu1 %v5239_v29  ;;  %v5312_v29 = vld [vmem:[#allocation5 + $0x7e0] ss:$24 sps:$4 sm:$0xff]  }
  0xb1   :  { %3814 = vmatpush1.bf16.msra.mxu0 %v5242_v30  ;;  %3692 = vmatprep.subr.bf16.mxu1 %v5247_v31  ;;  %v5315_v30 = vld [vmem:[#allocation5 + $0x10e0] ss:$24 sps:$4 sm:$0xff]   ;;  %v5320_v31 = vld [vmem:[#allocation5 + $0x814] ss:$24 sps:$4 sm:$0xff]  }
  0xb2   :  { %3815 = vmatprep.subr.bf16.mxu0 %v5250_v32  ;;  %v5323_v32 = vld [vmem:[#allocation5 + $0x1114] ss:$24 sps:$4 sm:$0xff]  }
  0xb4   :  { %3693 = vmatpush1.bf16.msra.mxu1 %v5245_v35  ;;  %v5318_v35 = vld [vmem:[#allocation5 + $0x810] ss:$24 sps:$4 sm:$0xff]  }
  0xb5   :  { %3816 = vmatpush1.bf16.msra.mxu0 %v5248_v36  ;;  %3703 = vmatprep.subr.bf16.mxu1 %v5254_v37  ;;  %v5321_v36 = vld [vmem:[#allocation5 + $0x1110] ss:$24 sps:$4 sm:$0xff]   ;;  %v5326_v37 = vld [vmem:[#allocation5 + $0x844] ss:$24 sps:$4 sm:$0xff]  }
  0xb6   :  { %3826 = vmatprep.subr.bf16.mxu0 %v5257_v38  ;;  %v5329_v38 = vld [vmem:[#allocation5 + $0x1144] ss:$24 sps:$4 sm:$0xff]  }
  0xb7   :  { %3695 = vmatmul.mubr.bf16.vlgmr.msra.gmra.mrb[0].mxu1 %v6139_v56 }
  0xb8   :  { %3818 = vmatmul.mubr.bf16.vlgmr.msra.gmra.mrb[0].mxu0 %v6143_v42  ;;  %3704 = vmatpush1.bf16.msra.mxu1 %v5252_v41  ;;  %v5332_v41 = vld [vmem:[#allocation5 + $0x874] ss:$24 sps:$4 sm:$0xff]  }
  0xb9   :  { %3827 = vmatpush1.bf16.msra.mxu0 %v5255_v44  ;;  %3705 = vmatprep.subr.bf16.mxu1 %v5260_v45  ;;  %v5335_v44 = vld [vmem:[#allocation5 + $0x1174] ss:$24 sps:$4 sm:$0xff]   ;;  %v5330_v45 = vld [vmem:[#allocation5 + $0x870] ss:$24 sps:$4 sm:$0xff]  }
  0xba   :  { %3828 = vmatprep.subr.bf16.mxu0 %v5263_v46  ;;  %3735 = vmatprep.mubr.bf16.mxu1 %v6145_v47  ;;  %v5333_v46 = vld [vmem:[#allocation5 + $0x1170] ss:$24 sps:$4 sm:$0xff]  }
  0xbb   :  { %3858 = vmatprep.mubr.bf16.mxu0 %v6147_v48 }
  0xbc   :  { %3706 = vmatpush1.bf16.msra.mxu1 %v5258_v14  ;;  %v5338_v14 = vld [vmem:[#allocation5 + $0x8a4] ss:$24 sps:$4 sm:$0xff]  }
  0xbd   :  { %3829 = vmatpush1.bf16.msra.mxu0 %v5261_v50  ;;  %3707 = vmatprep.subr.bf16.mxu1 %v5266_v51  ;;  %v5341_v50 = vld [vmem:[#allocation5 + $0x11a4] ss:$24 sps:$4 sm:$0xff]   ;;  %v5336_v51 = vld [vmem:[#allocation5 + $0x8a0] ss:$24 sps:$4 sm:$0xff]  }
  0xbe   :  { %3830 = vmatprep.subr.bf16.mxu0 %v5269_v52  ;;  %v5339_v52 = vld [vmem:[#allocation5 + $0x11a0] ss:$24 sps:$4 sm:$0xff]  }
  0xc0   :  { %3708 = vmatpush1.bf16.msra.mxu1 %v5264_v53  ;;  %v5344_v53 = vld [vmem:[#allocation5 + $0x8d4] ss:$24 sps:$4 sm:$0xff]  }
  0xc1   :  { %3831 = vmatpush1.bf16.msra.mxu0 %v5267_v54  ;;  %3709 = vmatprep.subr.bf16.mxu1 %v5272_v55  ;;  %v5347_v54 = vld [vmem:[#allocation5 + $0x11d4] ss:$24 sps:$4 sm:$0xff]   ;;  %v5342_v55 = vld [vmem:[#allocation5 + $0x8d0] ss:$24 sps:$4 sm:$0xff]  }
  0xc2   :  { %3832 = vmatprep.subr.bf16.mxu0 %v5275_v57  ;;  %v5345_v57 = vld [vmem:[#allocation5 + $0x11d0] ss:$24 sps:$4 sm:$0xff]  }
  0xc4   :  { %3710 = vmatpush1.bf16.msra.mxu1 %v5270_v58  ;;  %v5351_v58 = vld [vmem:[#allocation5 + $0xc] ss:$24 sps:$4 sm:$0xff]  }
  0xc5   :  { %3833 = vmatpush1.bf16.msra.mxu0 %v5273_v59  ;;  %3711 = vmatprep.subr.bf16.mxu1 %v5278_v62  ;;  %v5354_v59 = vld [vmem:[#allocation5 + $0x14] ss:$24 sps:$4 sm:$0xff]   ;;  %v6155_v62 = vpack.c.bf16 %v6128_v33, %v6128_v33  ;;  %v5358_v33 = vld [vmem:[#allocation5 + $0x40] ss:$24 sps:$4 sm:$0xff]  }
  0xc6   :  { %3834 = vmatprep.subr.bf16.mxu0 %v5281_v63  ;;  %v6159_v63 = vpack.c.bf16 %v6131_v34, %v6131_v34  ;;  %v5366_v34 = vld [vmem:[#allocation5 + $0x74] ss:$24 sps:$4 sm:$0xff]  }
  0xc8   :  { %3712 = vmatpush1.bf16.msra.mxu1 %v5276_v0  ;;  %v5349_v0 = vld [vmem:[#allocation5 + $0x8] ss:$24 sps:$4 sm:$0xff]  }
  0xc9   :  { %3835 = vmatpush1.bf16.msra.mxu0 %v5279_v1  ;;  %3713 = vmatprep.subr.bf16.mxu1 %v5284_v2  ;;  %v5352_v1 = vld [vmem:[#allocation5 + $0x10] ss:$24 sps:$4 sm:$0xff]   ;;  %v5357_v2 = vld [vmem:[#allocation5 + $0x3c] ss:$24 sps:$4 sm:$0xff]  }
  0xca   :  { %3836 = vmatprep.subr.bf16.mxu0 %v5287_v3  ;;  %v5360_v3 = vld [vmem:[#allocation5 + $0x44] ss:$24 sps:$4 sm:$0xff]  }
  0xcc   :  { %3714 = vmatpush1.bf16.msra.mxu1 %v5282_v5  ;;  %v5355_v5 = vld [vmem:[#allocation5 + $0x38] ss:$24 sps:$4 sm:$0xff]  }
  0xcd   :  { %3837 = vmatpush1.bf16.msra.mxu0 %v5285_v6  ;;  %3715 = vmatprep.subr.bf16.mxu1 %v5290_v7  ;;  %v5363_v6 = vld [vmem:[#allocation5 + $0x6c] ss:$24 sps:$4 sm:$0xff]   ;;  %v5361_v7 = vld [vmem:[#allocation5 + $0x68] ss:$24 sps:$4 sm:$0xff]  }
  0xce   :  { %3838 = vmatprep.subr.bf16.mxu0 %v5293_v8  ;;  %v5364_v8 = vld [vmem:[#allocation5 + $0x70] ss:$24 sps:$4 sm:$0xff]  }
  0xd0   :  { %3716 = vmatpush1.bf16.msra.mxu1 %v5288_v9  ;;  %v5369_v9 = vld [vmem:[#allocation5 + $0x9c] ss:$24 sps:$4 sm:$0xff]  }
  0xd1   :  { %3839 = vmatpush1.bf16.msra.mxu0 %v5291_v10  ;;  %3717 = vmatprep.subr.bf16.mxu1 %v5296_v11  ;;  %v5372_v10 = vld [vmem:[#allocation5 + $0xa4] ss:$24 sps:$4 sm:$0xff]   ;;  %v5367_v11 = vld [vmem:[#allocation5 + $0x98] ss:$24 sps:$4 sm:$0xff]  }
  0xd2   :  { %3840 = vmatprep.subr.bf16.mxu0 %v5299_v12  ;;  %v5370_v12 = vld [vmem:[#allocation5 + $0xa0] ss:$24 sps:$4 sm:$0xff]  }
  0xd4   :  { %3718 = vmatpush1.bf16.msra.mxu1 %v5294_v13  ;;  %v5375_v13 = vld [vmem:[#allocation5 + $0xcc] ss:$24 sps:$4 sm:$0xff]  }
  0xd5   :  { %3841 = vmatpush1.bf16.msra.mxu0 %v5297_v15  ;;  %3719 = vmatprep.subr.bf16.mxu1 %v5302_v16  ;;  %v5378_v15 = vld [vmem:[#allocation5 + $0xd4] ss:$24 sps:$4 sm:$0xff]   ;;  %v5373_v16 = vld [vmem:[#allocation5 + $0xc8] ss:$24 sps:$4 sm:$0xff]  }
  0xd6   :  { %3842 = vmatprep.subr.bf16.mxu0 %v5305_v17  ;;  %v5381_v17 = vld [vmem:[#allocation5 + $0xfc] ss:$24 sps:$4 sm:$0xff]  }
  0xd8   :  { %3720 = vmatpush1.bf16.msra.mxu1 %v5300_v18  ;;  %v5384_v18 = vld [vmem:[#allocation5 + $0x104] ss:$24 sps:$4 sm:$0xff]  }
  0xd9   :  { %3843 = vmatpush1.bf16.msra.mxu0 %v5303_v19  ;;  %3721 = vmatprep.subr.bf16.mxu1 %v5308_v22  ;;  %v5379_v19 = vld [vmem:[#allocation5 + $0xf8] ss:$24 sps:$4 sm:$0xff]  }
  0xda   :  { %3844 = vmatprep.subr.bf16.mxu0 %v5311_v23  ;;  %v5382_v22 = vld [vmem:[#allocation5 + $0x100] ss:$24 sps:$4 sm:$0xff]   ;;  %v5387_v23 = vld [vmem:[#allocation5 + $0x12c] ss:$24 sps:$4 sm:$0xff]  }
  0xdc   :  { %3722 = vmatpush1.bf16.msra.mxu1 %v5306_v24  ;;  %v5390_v24 = vld [vmem:[#allocation5 + $0x134] ss:$24 sps:$4 sm:$0xff]  }
  0xdd   :  { %3845 = vmatpush1.bf16.msra.mxu0 %v5309_v25  ;;  %3723 = vmatprep.subr.bf16.mxu1 %v5314_v27  ;;  %v5385_v25 = vld [vmem:[#allocation5 + $0x128] ss:$24 sps:$4 sm:$0xff]  }
  0xde   :  { %3846 = vmatprep.subr.bf16.mxu0 %v5317_v28  ;;  %v5388_v27 = vld [vmem:[#allocation5 + $0x130] ss:$24 sps:$4 sm:$0xff]   ;;  %v5393_v28 = vld [vmem:[#allocation5 + $0x15c] ss:$24 sps:$4 sm:$0xff]  }
  0xe0   :  { %3724 = vmatpush1.bf16.msra.mxu1 %v5312_v29  ;;  %v5396_v29 = vld [vmem:[#allocation5 + $0x164] ss:$24 sps:$4 sm:$0xff]  }
  0xe1   :  { %3847 = vmatpush1.bf16.msra.mxu0 %v5315_v30  ;;  %3725 = vmatprep.subr.bf16.mxu1 %v5320_v31  ;;  %v5391_v30 = vld [vmem:[#allocation5 + $0x158] ss:$24 sps:$4 sm:$0xff]  }
  0xe2   :  { %3848 = vmatprep.subr.bf16.mxu0 %v5323_v32  ;;  %v5394_v31 = vld [vmem:[#allocation5 + $0x160] ss:$24 sps:$4 sm:$0xff]   ;;  %v5399_v32 = vld [vmem:[#allocation5 + $0x18c] ss:$24 sps:$4 sm:$0xff]  }
  0xe4   :  { %3726 = vmatpush1.bf16.msra.mxu1 %v5318_v35  ;;  %v5402_v35 = vld [vmem:[#allocation5 + $0x194] ss:$24 sps:$4 sm:$0xff]  }
  0xe5   :  { %3849 = vmatpush1.bf16.msra.mxu0 %v5321_v36  ;;  %3727 = vmatprep.subr.bf16.mxu1 %v5326_v37  ;;  %v5397_v36 = vld [vmem:[#allocation5 + $0x188] ss:$24 sps:$4 sm:$0xff]  }
  0xe6   :  { %3850 = vmatprep.subr.bf16.mxu0 %v5329_v38  ;;  %v5400_v37 = vld [vmem:[#allocation5 + $0x190] ss:$24 sps:$4 sm:$0xff]   ;;  %v5405_v38 = vld [vmem:[#allocation5 + $0x1bc] ss:$24 sps:$4 sm:$0xff]  }
  0xe8   :  { %3728 = vmatpush1.bf16.msra.mxu1 %v5324_v39  ;;  %v5408_v39 = vld [vmem:[#allocation5 + $0x1c4] ss:$24 sps:$4 sm:$0xff]  }
  0xe9   :  { %3851 = vmatpush1.bf16.msra.mxu0 %v5327_v40  ;;  %3729 = vmatprep.subr.bf16.mxu1 %v5332_v41  ;;  %v5403_v40 = vld [vmem:[#allocation5 + $0x1b8] ss:$24 sps:$4 sm:$0xff]  }
  0xea   :  { %3852 = vmatprep.subr.bf16.mxu0 %v5335_v44  ;;  %v5406_v41 = vld [vmem:[#allocation5 + $0x1c0] ss:$24 sps:$4 sm:$0xff]   ;;  %v5411_v44 = vld [vmem:[#allocation5 + $0x1ec] ss:$24 sps:$4 sm:$0xff]  }
  0xec   :  { %3730 = vmatpush1.bf16.msra.mxu1 %v5330_v45  ;;  %v5414_v45 = vld [vmem:[#allocation5 + $0x1f4] ss:$24 sps:$4 sm:$0xff]  }
  0xed   :  { %3853 = vmatpush1.bf16.msra.mxu0 %v5333_v46  ;;  %3731 = vmatprep.subr.bf16.mxu1 %v5338_v14  ;;  %v5409_v46 = vld [vmem:[#allocation5 + $0x1e8] ss:$24 sps:$4 sm:$0xff]  }
  0xee   :  { %3854 = vmatprep.subr.bf16.mxu0 %v5341_v50  ;;  %v5412_v14 = vld [vmem:[#allocation5 + $0x1f0] ss:$24 sps:$4 sm:$0xff]   ;;  %v5417_v50 = vld [vmem:[#allocation5 + $0x21c] ss:$24 sps:$4 sm:$0xff]  }
  0xf0   :  { %3732 = vmatpush1.bf16.msra.mxu1 %v5336_v51  ;;  %v5420_v51 = vld [vmem:[#allocation5 + $0x224] ss:$24 sps:$4 sm:$0xff]  }
  0xf1   :  { %3855 = vmatpush1.bf16.msra.mxu0 %v5339_v52  ;;  %3733 = vmatprep.subr.bf16.mxu1 %v5344_v53  ;;  %v5415_v52 = vld [vmem:[#allocation5 + $0x218] ss:$24 sps:$4 sm:$0xff]  }
  0xf2   :  { %3856 = vmatprep.subr.bf16.mxu0 %v5347_v54  ;;  %v5418_v53 = vld [vmem:[#allocation5 + $0x220] ss:$24 sps:$4 sm:$0xff]   ;;  %v5423_v54 = vld [vmem:[#allocation5 + $0x24c] ss:$24 sps:$4 sm:$0xff]  }
  0xf4   :  { %3734 = vmatpush1.bf16.msra.mxu1 %v5342_v55  ;;  %v5426_v55 = vld [vmem:[#allocation5 + $0x254] ss:$24 sps:$4 sm:$0xff]  }
  0xf5   :  { %3857 = vmatpush1.bf16.msra.mxu0 %v5345_v57  ;;  %3867 = vmatprep.subr.bf16.mxu1 %v5351_v58  ;;  %v5421_v57 = vld [vmem:[#allocation5 + $0x248] ss:$24 sps:$4 sm:$0xff]  }
  0xf6   :  { %4113 = vmatprep.subr.bf16.mxu0 %v5354_v59  ;;  %v5424_v58 = vld [vmem:[#allocation5 + $0x250] ss:$24 sps:$4 sm:$0xff]   ;;  %v5429_v59 = vld [vmem:[#allocation5 + $0x27c] ss:$24 sps:$4 sm:$0xff]  }
  0xf7   :  { %3736 = vmatmul.mubr.bf16.vlgmr.msra.gmra.mrb[0].mxu1 %v6155_v62 }
  0xf8   :  { %3859 = vmatmul.mubr.bf16.vlgmr.msra.gmra.mrb[0].mxu0 %v6159_v63  ;;  %3868 = vmatpush1.bf16.msra.mxu1 %v5349_v0  ;;  %v5432_v0 = vld [vmem:[#allocation5 + $0x284] ss:$24 sps:$4 sm:$0xff]  }
  0xf9   :  { %4114 = vmatpush1.bf16.msra.mxu0 %v5352_v1  ;;  %3869 = vmatprep.subr.bf16.mxu1 %v5357_v2  ;;  %v5427_v1 = vld [vmem:[#allocation5 + $0x278] ss:$24 sps:$4 sm:$0xff]  }
  0xfa   :  { %4115 = vmatprep.subr.bf16.mxu0 %v5360_v3  ;;  %3899 = vmatprep.mubr.bf16.mxu1 %v6092_v61  ;;  %v5430_v2 = vld [vmem:[#allocation5 + $0x280] ss:$24 sps:$4 sm:$0xff]   ;;  %v5435_v3 = vld [vmem:[#allocation5 + $0x2ac] ss:$24 sps:$4 sm:$0xff]  }
  0xfb   :  { %4145 = vmatprep.mubr.bf16.mxu0 %v6092_v61  ;;  %v5376_v61 = vld [vmem:[#allocation5 + $0xd0] ss:$24 sps:$4 sm:$0xff]  }
  0xfc   :  { %3870 = vmatpush1.bf16.msra.mxu1 %v5355_v5  ;;  %v5438_v5 = vld [vmem:[#allocation5 + $0x2b4] ss:$24 sps:$4 sm:$0xff]  }
  0xfd   :  { %4116 = vmatpush1.bf16.msra.mxu0 %v5358_v33  ;;  %3871 = vmatprep.subr.bf16.mxu1 %v5363_v6  ;;  %v5433_v33 = vld [vmem:[#allocation5 + $0x2a8] ss:$24 sps:$4 sm:$0xff]  }
  0xfe   :  { %4117 = vmatprep.subr.bf16.mxu0 %v5366_v34  ;;  %v5436_v6 = vld [vmem:[#allocation5 + $0x2b0] ss:$24 sps:$4 sm:$0xff]   ;;  %v5441_v34 = vld [vmem:[#allocation5 + $0x2dc] ss:$24 sps:$4 sm:$0xff]  }
 0x100   :  { %3872 = vmatpush1.bf16.msra.mxu1 %v5361_v7  ;;  %v5444_v7 = vld [vmem:[#allocation5 + $0x2e4] ss:$24 sps:$4 sm:$0xff]  }
 0x101   :  { %4118 = vmatpush1.bf16.msra.mxu0 %v5364_v8  ;;  %3873 = vmatprep.subr.bf16.mxu1 %v5369_v9  ;;  %v5439_v8 = vld [vmem:[#allocation5 + $0x2d8] ss:$24 sps:$4 sm:$0xff]  }
 0x102   :  { %4119 = vmatprep.subr.bf16.mxu0 %v5372_v10  ;;  %v5442_v9 = vld [vmem:[#allocation5 + $0x2e0] ss:$24 sps:$4 sm:$0xff]   ;;  %v5447_v10 = vld [vmem:[#allocation5 + $0x30c] ss:$24 sps:$4 sm:$0xff]  }
 0x104   :  { %3874 = vmatpush1.bf16.msra.mxu1 %v5367_v11  ;;  %v5450_v11 = vld [vmem:[#allocation5 + $0x314] ss:$24 sps:$4 sm:$0xff]  }
 0x105   :  { %4120 = vmatpush1.bf16.msra.mxu0 %v5370_v12  ;;  %3875 = vmatprep.subr.bf16.mxu1 %v5375_v13  ;;  %v5445_v12 = vld [vmem:[#allocation5 + $0x308] ss:$24 sps:$4 sm:$0xff]  }
 0x106   :  { %4121 = vmatprep.subr.bf16.mxu0 %v5378_v15  ;;  %v5448_v13 = vld [vmem:[#allocation5 + $0x310] ss:$24 sps:$4 sm:$0xff]   ;;  %v5453_v15 = vld [vmem:[#allocation5 + $0x33c] ss:$24 sps:$4 sm:$0xff]  }
 0x108   :  { %3876 = vmatpush1.bf16.msra.mxu1 %v5373_v16  ;;  %v5456_v16 = vld [vmem:[#allocation5 + $0x344] ss:$24 sps:$4 sm:$0xff]  }
 0x109   :  { %4122 = vmatpush1.bf16.msra.mxu0 %v5376_v61  ;;  %3877 = vmatprep.subr.bf16.mxu1 %v5381_v17  ;;  %v5451_v61 = vld [vmem:[#allocation5 + $0x338] ss:$24 sps:$4 sm:$0xff]  }
 0x10a   :  { %4123 = vmatprep.subr.bf16.mxu0 %v5384_v18  ;;  %v5454_v17 = vld [vmem:[#allocation5 + $0x340] ss:$24 sps:$4 sm:$0xff]   ;;  %v5459_v18 = vld [vmem:[#allocation5 + $0x36c] ss:$24 sps:$4 sm:$0xff]  }
 0x10c   :  { %3878 = vmatpush1.bf16.msra.mxu1 %v5379_v19  ;;  %v5462_v19 = vld [vmem:[#allocation5 + $0x374] ss:$24 sps:$4 sm:$0xff]  }
 0x10d   :  { %4124 = vmatpush1.bf16.msra.mxu0 %v5382_v22  ;;  %3879 = vmatprep.subr.bf16.mxu1 %v5387_v23  ;;  %v5457_v22 = vld [vmem:[#allocation5 + $0x368] ss:$24 sps:$4 sm:$0xff]  }
 0x10e   :  { %4125 = vmatprep.subr.bf16.mxu0 %v5390_v24  ;;  %v5460_v23 = vld [vmem:[#allocation5 + $0x370] ss:$24 sps:$4 sm:$0xff]   ;;  %v5465_v24 = vld [vmem:[#allocation5 + $0x39c] ss:$24 sps:$4 sm:$0xff]  }
 0x110   :  { %3880 = vmatpush1.bf16.msra.mxu1 %v5385_v25  ;;  %v5463_v25 = vld [vmem:[#allocation5 + $0x398] ss:$24 sps:$4 sm:$0xff]  }
 0x111   :  { %4126 = vmatpush1.bf16.msra.mxu0 %v5388_v27  ;;  %3881 = vmatprep.subr.bf16.mxu1 %v5393_v28  ;;  %v5466_v27 = vld [vmem:[#allocation5 + $0x3a0] ss:$24 sps:$4 sm:$0xff]   ;;  %v5471_v28 = vld [vmem:[#allocation5 + $0x3cc] ss:$24 sps:$4 sm:$0xff]  }
 0x112   :  { %4127 = vmatprep.subr.bf16.mxu0 %v5396_v29  ;;  %v5474_v29 = vld [vmem:[#allocation5 + $0x3d4] ss:$24 sps:$4 sm:$0xff]  }
 0x114   :  { %3882 = vmatpush1.bf16.msra.mxu1 %v5391_v30  ;;  %v5469_v30 = vld [vmem:[#allocation5 + $0x3c8] ss:$24 sps:$4 sm:$0xff]  }
 0x115   :  { %4128 = vmatpush1.bf16.msra.mxu0 %v5394_v31  ;;  %3883 = vmatprep.subr.bf16.mxu1 %v5399_v32  ;;  %v5477_v31 = vld [vmem:[#allocation5 + $0x3fc] ss:$24 sps:$4 sm:$0xff]  }
 0x116   :  { %4129 = vmatprep.subr.bf16.mxu0 %v5402_v35  ;;  %v5480_v32 = vld [vmem:[#allocation5 + $0x404] ss:$24 sps:$4 sm:$0xff]   ;;  %v5475_v35 = vld [vmem:[#allocation5 + $0x3f8] ss:$24 sps:$4 sm:$0xff]  }
 0x118   :  { %3884 = vmatpush1.bf16.msra.mxu1 %v5397_v36  ;;  %v5478_v36 = vld [vmem:[#allocation5 + $0x400] ss:$24 sps:$4 sm:$0xff]  }
 0x119   :  { %4130 = vmatpush1.bf16.msra.mxu0 %v5400_v37  ;;  %3885 = vmatprep.subr.bf16.mxu1 %v5405_v38  ;;  %v5483_v37 = vld [vmem:[#allocation5 + $0x42c] ss:$24 sps:$4 sm:$0xff]  }
 0x11a   :  { %4131 = vmatprep.subr.bf16.mxu0 %v5408_v39  ;;  %v5486_v38 = vld [vmem:[#allocation5 + $0x434] ss:$24 sps:$4 sm:$0xff]   ;;  %v5481_v39 = vld [vmem:[#allocation5 + $0x428] ss:$24 sps:$4 sm:$0xff]  }
 0x11c   :  { %3886 = vmatpush1.bf16.msra.mxu1 %v5403_v40  ;;  %v5484_v40 = vld [vmem:[#allocation5 + $0x430] ss:$24 sps:$4 sm:$0xff]  }
 0x11d   :  { %4132 = vmatpush1.bf16.msra.mxu0 %v5406_v41  ;;  %3887 = vmatprep.subr.bf16.mxu1 %v5411_v44  ;;  %v5489_v41 = vld [vmem:[#allocation5 + $0x45c] ss:$24 sps:$4 sm:$0xff]  }
 0x11e   :  { %4133 = vmatprep.subr.bf16.mxu0 %v5414_v45  ;;  %v5492_v44 = vld [vmem:[#allocation5 + $0x464] ss:$24 sps:$4 sm:$0xff]   ;;  %v5487_v45 = vld [vmem:[#allocation5 + $0x458] ss:$24 sps:$4 sm:$0xff]  }
 0x120   :  { %3888 = vmatpush1.bf16.msra.mxu1 %v5409_v46  ;;  %v5490_v46 = vld [vmem:[#allocation5 + $0x460] ss:$24 sps:$4 sm:$0xff]  }
 0x121   :  { %4134 = vmatpush1.bf16.msra.mxu0 %v5412_v14  ;;  %3889 = vmatprep.subr.bf16.mxu1 %v5417_v50  ;;  %v5495_v14 = vld [vmem:[#allocation5 + $0x48c] ss:$24 sps:$4 sm:$0xff]  }
 0x122   :  { %4135 = vmatprep.subr.bf16.mxu0 %v5420_v51  ;;  %v5498_v50 = vld [vmem:[#allocation5 + $0x494] ss:$24 sps:$4 sm:$0xff]   ;;  %v5493_v51 = vld [vmem:[#allocation5 + $0x488] ss:$24 sps:$4 sm:$0xff]  }
 0x124   :  { %3890 = vmatpush1.bf16.msra.mxu1 %v5415_v52  ;;  %v5496_v52 = vld [vmem:[#allocation5 + $0x490] ss:$24 sps:$4 sm:$0xff]  }
 0x125   :  { %4136 = vmatpush1.bf16.msra.mxu0 %v5418_v53  ;;  %3891 = vmatprep.subr.bf16.mxu1 %v5423_v54  ;;  %v5501_v53 = vld [vmem:[#allocation5 + $0x4bc] ss:$24 sps:$4 sm:$0xff]  }
 0x126   :  { %4137 = vmatprep.subr.bf16.mxu0 %v5426_v55  ;;  %v5504_v54 = vld [vmem:[#allocation5 + $0x4c4] ss:$24 sps:$4 sm:$0xff]   ;;  %v5499_v55 = vld [vmem:[#allocation5 + $0x4b8] ss:$24 sps:$4 sm:$0xff]  }
 0x128   :  { %3892 = vmatpush1.bf16.msra.mxu1 %v5421_v57  ;;  %v5502_v57 = vld [vmem:[#allocation5 + $0x4c0] ss:$24 sps:$4 sm:$0xff]  }
 0x129   :  { %4138 = vmatpush1.bf16.msra.mxu0 %v5424_v58  ;;  %3893 = vmatprep.subr.bf16.mxu1 %v5429_v59  ;;  %v5507_v58 = vld [vmem:[#allocation5 + $0x4ec] ss:$24 sps:$4 sm:$0xff]  }
 0x12a   :  { %4139 = vmatprep.subr.bf16.mxu0 %v5432_v0  ;;  %v5510_v59 = vld [vmem:[#allocation5 + $0x4f4] ss:$24 sps:$4 sm:$0xff]   ;;  %v5505_v0 = vld [vmem:[#allocation5 + $0x4e8] ss:$24 sps:$4 sm:$0xff]  }
 0x12c   :  { %3894 = vmatpush1.bf16.msra.mxu1 %v5427_v1  ;;  %v5508_v1 = vld [vmem:[#allocation5 + $0x4f0] ss:$24 sps:$4 sm:$0xff]  }
 0x12d   :  { %4140 = vmatpush1.bf16.msra.mxu0 %v5430_v2  ;;  %3895 = vmatprep.subr.bf16.mxu1 %v5435_v3  ;;  %v5513_v2 = vld [vmem:[#allocation5 + $0x51c] ss:$24 sps:$4 sm:$0xff]  }
 0x12e   :  { %4141 = vmatprep.subr.bf16.mxu0 %v5438_v5  ;;  %v5516_v3 = vld [vmem:[#allocation5 + $0x524] ss:$24 sps:$4 sm:$0xff]   ;;  %v5511_v5 = vld [vmem:[#allocation5 + $0x518] ss:$24 sps:$4 sm:$0xff]  }
 0x130   :  { %3896 = vmatpush1.bf16.msra.mxu1 %v5433_v33  ;;  %v5514_v33 = vld [vmem:[#allocation5 + $0x520] ss:$24 sps:$4 sm:$0xff]  }
 0x131   :  { %4142 = vmatpush1.bf16.msra.mxu0 %v5436_v6  ;;  %3897 = vmatprep.subr.bf16.mxu1 %v5441_v34  ;;  %v5519_v6 = vld [vmem:[#allocation5 + $0x54c] ss:$24 sps:$4 sm:$0xff]  }
 0x132   :  { %4143 = vmatprep.subr.bf16.mxu0 %v5444_v7  ;;  %v5522_v34 = vld [vmem:[#allocation5 + $0x554] ss:$24 sps:$4 sm:$0xff]   ;;  %v5517_v7 = vld [vmem:[#allocation5 + $0x548] ss:$24 sps:$4 sm:$0xff]  }
 0x134   :  { %3898 = vmatpush1.bf16.msra.mxu1 %v5439_v8  ;;  %v5520_v8 = vld [vmem:[#allocation5 + $0x550] ss:$24 sps:$4 sm:$0xff]  }
 0x135   :  { %4144 = vmatpush1.bf16.msra.mxu0 %v5442_v9  ;;  %3908 = vmatprep.subr.bf16.mxu1 %v5447_v10  ;;  %v5525_v9 = vld [vmem:[#allocation5 + $0x57c] ss:$24 sps:$4 sm:$0xff]  }
 0x136   :  { %4154 = vmatprep.subr.bf16.mxu0 %v5450_v11  ;;  %v5528_v10 = vld [vmem:[#allocation5 + $0x584] ss:$24 sps:$4 sm:$0xff]   ;;  %v5523_v11 = vld [vmem:[#allocation5 + $0x578] ss:$24 sps:$4 sm:$0xff]  }
 0x137   :  { %3900 = vmatmul.mubr.bf16.vlgmr.msra.gmra.mrb[4].mxu1 %v6104_v20 }
 0x138   :  { %4146 = vmatmul.mubr.bf16.vlgmr.msra.gmra.mrb[4].mxu0 %v6104_v20  ;;  %3909 = vmatpush1.bf16.msra.mxu1 %v5445_v12  ;;  %v5468_v20 = vld [vmem:[#allocation5 + $0x3a4] ss:$24 sps:$4 sm:$0xff]   ;;  %v5526_v12 = vld [vmem:[#allocation5 + $0x580] ss:$24 sps:$4 sm:$0xff]  }
 0x139   :  { %4155 = vmatpush1.bf16.msra.mxu0 %v5448_v13  ;;  %3910 = vmatprep.subr.bf16.mxu1 %v5453_v15  ;;  %v5531_v13 = vld [vmem:[#allocation5 + $0x5ac] ss:$24 sps:$4 sm:$0xff]  }
 0x13a   :  { %4156 = vmatprep.subr.bf16.mxu0 %v5456_v16  ;;  %3940 = vmatprep.mubr.bf16.mxu1 %v6108_v26  ;;  %v5534_v15 = vld [vmem:[#allocation5 + $0x5b4] ss:$24 sps:$4 sm:$0xff]   ;;  %v5529_v16 = vld [vmem:[#allocation5 + $0x5a8] ss:$24 sps:$4 sm:$0xff]  }
 0x13b   :  { %4186 = vmatprep.mubr.bf16.mxu0 %v6108_v26  ;;  %v5472_v26 = vld [vmem:[#allocation5 + $0x3d0] ss:$24 sps:$4 sm:$0xff]  }
 0x13c   :  { %3911 = vmatpush1.bf16.msra.mxu1 %v5451_v61  ;;  %v5532_v61 = vld [vmem:[#allocation5 + $0x5b0] ss:$24 sps:$4 sm:$0xff]  }
 0x13d   :  { %4157 = vmatpush1.bf16.msra.mxu0 %v5454_v17  ;;  %3912 = vmatprep.subr.bf16.mxu1 %v5459_v18  ;;  %v5537_v17 = vld [vmem:[#allocation5 + $0x5dc] ss:$24 sps:$4 sm:$0xff]  }
 0x13e   :  { %4158 = vmatprep.subr.bf16.mxu0 %v5462_v19  ;;  %v5540_v18 = vld [vmem:[#allocation5 + $0x5e4] ss:$24 sps:$4 sm:$0xff]   ;;  %v5535_v19 = vld [vmem:[#allocation5 + $0x5d8] ss:$24 sps:$4 sm:$0xff]  }
 0x140   :  { %3913 = vmatpush1.bf16.msra.mxu1 %v5457_v22  ;;  %v5538_v22 = vld [vmem:[#allocation5 + $0x5e0] ss:$24 sps:$4 sm:$0xff]  }
 0x141   :  { %4159 = vmatpush1.bf16.msra.mxu0 %v5460_v23  ;;  %3914 = vmatprep.subr.bf16.mxu1 %v5465_v24  ;;  %v5543_v23 = vld [vmem:[#allocation5 + $0x60c] ss:$24 sps:$4 sm:$0xff]  }
 0x142   :  { %4160 = vmatprep.subr.bf16.mxu0 %v5468_v20  ;;  %v5546_v24 = vld [vmem:[#allocation5 + $0x614] ss:$24 sps:$4 sm:$0xff]   ;;  %v5541_v20 = vld [vmem:[#allocation5 + $0x608] ss:$24 sps:$4 sm:$0xff]  }
 0x144   :  { %3915 = vmatpush1.bf16.msra.mxu1 %v5463_v25  ;;  %v5544_v25 = vld [vmem:[#allocation5 + $0x610] ss:$24 sps:$4 sm:$0xff]  }
 0x145   :  { %4161 = vmatpush1.bf16.msra.mxu0 %v5466_v27  ;;  %3916 = vmatprep.subr.bf16.mxu1 %v5471_v28  ;;  %v5549_v27 = vld [vmem:[#allocation5 + $0x63c] ss:$24 sps:$4 sm:$0xff]  }
 0x146   :  { %4162 = vmatprep.subr.bf16.mxu0 %v5474_v29  ;;  %v5552_v28 = vld [vmem:[#allocation5 + $0x644] ss:$24 sps:$4 sm:$0xff]   ;;  %v5547_v29 = vld [vmem:[#allocation5 + $0x638] ss:$24 sps:$4 sm:$0xff]  }
 0x148   :  { %3917 = vmatpush1.bf16.msra.mxu1 %v5469_v30  ;;  %v5550_v30 = vld [vmem:[#allocation5 + $0x640] ss:$24 sps:$4 sm:$0xff]  }
 0x149   :  { %4163 = vmatpush1.bf16.msra.mxu0 %v5472_v26  ;;  %3918 = vmatprep.subr.bf16.mxu1 %v5477_v31  ;;  %v5555_v26 = vld [vmem:[#allocation5 + $0x66c] ss:$24 sps:$4 sm:$0xff]  }
 0x14a   :  { %4164 = vmatprep.subr.bf16.mxu0 %v5480_v32  ;;  %v5558_v31 = vld [vmem:[#allocation5 + $0x674] ss:$24 sps:$4 sm:$0xff]   ;;  %v5553_v32 = vld [vmem:[#allocation5 + $0x668] ss:$24 sps:$4 sm:$0xff]  }
 0x14c   :  { %3919 = vmatpush1.bf16.msra.mxu1 %v5475_v35  ;;  %v5556_v35 = vld [vmem:[#allocation5 + $0x670] ss:$24 sps:$4 sm:$0xff]  }
 0x14d   :  { %4165 = vmatpush1.bf16.msra.mxu0 %v5478_v36  ;;  %3920 = vmatprep.subr.bf16.mxu1 %v5483_v37  ;;  %v5561_v36 = vld [vmem:[#allocation5 + $0x69c] ss:$24 sps:$4 sm:$0xff]   ;;  %v5559_v37 = vld [vmem:[#allocation5 + $0x698] ss:$24 sps:$4 sm:$0xff]  }
 0x14e   :  { %4166 = vmatprep.subr.bf16.mxu0 %v5486_v38  ;;  %v5562_v38 = vld [vmem:[#allocation5 + $0x6a0] ss:$24 sps:$4 sm:$0xff]  }
 0x150   :  { %3921 = vmatpush1.bf16.msra.mxu1 %v5481_v39  ;;  %v5567_v39 = vld [vmem:[#allocation5 + $0x6cc] ss:$24 sps:$4 sm:$0xff]  }
 0x151   :  { %4167 = vmatpush1.bf16.msra.mxu0 %v5484_v40  ;;  %3922 = vmatprep.subr.bf16.mxu1 %v5489_v41  ;;  %v5570_v40 = vld [vmem:[#allocation5 + $0x6d4] ss:$24 sps:$4 sm:$0xff]   ;;  %v5565_v41 = vld [vmem:[#allocation5 + $0x6c8] ss:$24 sps:$4 sm:$0xff]  }
 0x152   :  { %4168 = vmatprep.subr.bf16.mxu0 %v5492_v44  ;;  %v5573_v44 = vld [vmem:[#allocation5 + $0x6fc] ss:$24 sps:$4 sm:$0xff]  }
 0x154   :  { %3923 = vmatpush1.bf16.msra.mxu1 %v5487_v45  ;;  %v5576_v45 = vld [vmem:[#allocation5 + $0x704] ss:$24 sps:$4 sm:$0xff]  }
 0x155   :  { %4169 = vmatpush1.bf16.msra.mxu0 %v5490_v46  ;;  %3924 = vmatprep.subr.bf16.mxu1 %v5495_v14  ;;  %v5571_v46 = vld [vmem:[#allocation5 + $0x6f8] ss:$24 sps:$4 sm:$0xff]  }
 0x156   :  { %4170 = vmatprep.subr.bf16.mxu0 %v5498_v50  ;;  %v5574_v14 = vld [vmem:[#allocation5 + $0x700] ss:$24 sps:$4 sm:$0xff]   ;;  %v5579_v50 = vld [vmem:[#allocation5 + $0x72c] ss:$24 sps:$4 sm:$0xff]  }
 0x158   :  { %3925 = vmatpush1.bf16.msra.mxu1 %v5493_v51  ;;  %v5582_v51 = vld [vmem:[#allocation5 + $0x734] ss:$24 sps:$4 sm:$0xff]  }
 0x159   :  { %4171 = vmatpush1.bf16.msra.mxu0 %v5496_v52  ;;  %3926 = vmatprep.subr.bf16.mxu1 %v5501_v53  ;;  %v5577_v52 = vld [vmem:[#allocation5 + $0x728] ss:$24 sps:$4 sm:$0xff]  }
 0x15a   :  { %4172 = vmatprep.subr.bf16.mxu0 %v5504_v54  ;;  %v5580_v53 = vld [vmem:[#allocation5 + $0x730] ss:$24 sps:$4 sm:$0xff]   ;;  %v5585_v54 = vld [vmem:[#allocation5 + $0x75c] ss:$24 sps:$4 sm:$0xff]  }
 0x15c   :  { %3927 = vmatpush1.bf16.msra.mxu1 %v5499_v55  ;;  %v5588_v55 = vld [vmem:[#allocation5 + $0x764] ss:$24 sps:$4 sm:$0xff]  }
 0x15d   :  { %4173 = vmatpush1.bf16.msra.mxu0 %v5502_v57  ;;  %3928 = vmatprep.subr.bf16.mxu1 %v5507_v58  ;;  %v5583_v57 = vld [vmem:[#allocation5 + $0x758] ss:$24 sps:$4 sm:$0xff]  }
 0x15e   :  { %4174 = vmatprep.subr.bf16.mxu0 %v5510_v59  ;;  %v5586_v58 = vld [vmem:[#allocation5 + $0x760] ss:$24 sps:$4 sm:$0xff]   ;;  %v5591_v59 = vld [vmem:[#allocation5 + $0x78c] ss:$24 sps:$4 sm:$0xff]  }
 0x160   :  { %3929 = vmatpush1.bf16.msra.mxu1 %v5505_v0  ;;  %v5594_v0 = vld [vmem:[#allocation5 + $0x794] ss:$24 sps:$4 sm:$0xff]  }
 0x161   :  { %4175 = vmatpush1.bf16.msra.mxu0 %v5508_v1  ;;  %3930 = vmatprep.subr.bf16.mxu1 %v5513_v2  ;;  %v5589_v1 = vld [vmem:[#allocation5 + $0x788] ss:$24 sps:$4 sm:$0xff]  }
 0x162   :  { %4176 = vmatprep.subr.bf16.mxu0 %v5516_v3  ;;  %v5592_v2 = vld [vmem:[#allocation5 + $0x790] ss:$24 sps:$4 sm:$0xff]   ;;  %v5597_v3 = vld [vmem:[#allocation5 + $0x7bc] ss:$24 sps:$4 sm:$0xff]  }
 0x164   :  { %3931 = vmatpush1.bf16.msra.mxu1 %v5511_v5  ;;  %v5600_v5 = vld [vmem:[#allocation5 + $0x7c4] ss:$24 sps:$4 sm:$0xff]  }
 0x165   :  { %4177 = vmatpush1.bf16.msra.mxu0 %v5514_v33  ;;  %3932 = vmatprep.subr.bf16.mxu1 %v5519_v6  ;;  %v5595_v33 = vld [vmem:[#allocation5 + $0x7b8] ss:$24 sps:$4 sm:$0xff]  }
 0x166   :  { %4178 = vmatprep.subr.bf16.mxu0 %v5522_v34  ;;  %v5598_v6 = vld [vmem:[#allocation5 + $0x7c0] ss:$24 sps:$4 sm:$0xff]   ;;  %v5603_v34 = vld [vmem:[#allocation5 + $0x7ec] ss:$24 sps:$4 sm:$0xff]  }
 0x168   :  { %3933 = vmatpush1.bf16.msra.mxu1 %v5517_v7  ;;  %v5606_v7 = vld [vmem:[#allocation5 + $0x7f4] ss:$24 sps:$4 sm:$0xff]  }
 0x169   :  { %4179 = vmatpush1.bf16.msra.mxu0 %v5520_v8  ;;  %3934 = vmatprep.subr.bf16.mxu1 %v5525_v9  ;;  %v5601_v8 = vld [vmem:[#allocation5 + $0x7e8] ss:$24 sps:$4 sm:$0xff]  }
 0x16a   :  { %4180 = vmatprep.subr.bf16.mxu0 %v5528_v10  ;;  %v5604_v9 = vld [vmem:[#allocation5 + $0x7f0] ss:$24 sps:$4 sm:$0xff]   ;;  %v5609_v10 = vld [vmem:[#allocation5 + $0x81c] ss:$24 sps:$4 sm:$0xff]  }
 0x16c   :  { %3935 = vmatpush1.bf16.msra.mxu1 %v5523_v11  ;;  %v5612_v11 = vld [vmem:[#allocation5 + $0x824] ss:$24 sps:$4 sm:$0xff]  }
 0x16d   :  { %4181 = vmatpush1.bf16.msra.mxu0 %v5526_v12  ;;  %3936 = vmatprep.subr.bf16.mxu1 %v5531_v13  ;;  %v5607_v12 = vld [vmem:[#allocation5 + $0x818] ss:$24 sps:$4 sm:$0xff]  }
 0x16e   :  { %4182 = vmatprep.subr.bf16.mxu0 %v5534_v15  ;;  %v5610_v13 = vld [vmem:[#allocation5 + $0x820] ss:$24 sps:$4 sm:$0xff]   ;;  %v5615_v15 = vld [vmem:[#allocation5 + $0x84c] ss:$24 sps:$4 sm:$0xff]  }
 0x170   :  { %3937 = vmatpush1.bf16.msra.mxu1 %v5529_v16  ;;  %v5618_v16 = vld [vmem:[#allocation5 + $0x854] ss:$24 sps:$4 sm:$0xff]  }
 0x171   :  { %4183 = vmatpush1.bf16.msra.mxu0 %v5532_v61  ;;  %3938 = vmatprep.subr.bf16.mxu1 %v5537_v17  ;;  %v5613_v61 = vld [vmem:[#allocation5 + $0x848] ss:$24 sps:$4 sm:$0xff]  }
 0x172   :  { %4184 = vmatprep.subr.bf16.mxu0 %v5540_v18  ;;  %v5616_v17 = vld [vmem:[#allocation5 + $0x850] ss:$24 sps:$4 sm:$0xff]   ;;  %v5621_v18 = vld [vmem:[#allocation5 + $0x87c] ss:$24 sps:$4 sm:$0xff]  }
 0x174   :  { %3939 = vmatpush1.bf16.msra.mxu1 %v5535_v19  ;;  %v5624_v19 = vld [vmem:[#allocation5 + $0x884] ss:$24 sps:$4 sm:$0xff]  }
 0x175   :  { %4185 = vmatpush1.bf16.msra.mxu0 %v5538_v22  ;;  %3949 = vmatprep.subr.bf16.mxu1 %v5543_v23  ;;  %v5619_v22 = vld [vmem:[#allocation5 + $0x878] ss:$24 sps:$4 sm:$0xff]  }
 0x176   :  { %4195 = vmatprep.subr.bf16.mxu0 %v5546_v24  ;;  %v5622_v23 = vld [vmem:[#allocation5 + $0x880] ss:$24 sps:$4 sm:$0xff]   ;;  %v5627_v24 = vld [vmem:[#allocation5 + $0x8ac] ss:$24 sps:$4 sm:$0xff]  }
 0x177   :  { %3941 = vmatmul.mubr.bf16.vlgmr.msra.gmra.mrb[4].mxu1 %v6139_v56 }
 0x178   :  { %4187 = vmatmul.mubr.bf16.vlgmr.msra.gmra.mrb[4].mxu0 %v6139_v56  ;;  %3950 = vmatpush1.bf16.msra.mxu1 %v5541_v20  ;;  %v5564_v56 = vld [vmem:[#allocation5 + $0x6a4] ss:$24 sps:$4 sm:$0xff]   ;;  %v5630_v20 = vld [vmem:[#allocation5 + $0x8b4] ss:$24 sps:$4 sm:$0xff]  }
 0x179   :  { %4196 = vmatpush1.bf16.msra.mxu0 %v5544_v25  ;;  %3951 = vmatprep.subr.bf16.mxu1 %v5549_v27  ;;  %v5625_v25 = vld [vmem:[#allocation5 + $0x8a8] ss:$24 sps:$4 sm:$0xff]  }
 0x17a   :  { %4197 = vmatprep.subr.bf16.mxu0 %v5552_v28  ;;  %3981 = vmatprep.mubr.bf16.mxu1 %v6145_v47  ;;  %v5628_v27 = vld [vmem:[#allocation5 + $0x8b0] ss:$24 sps:$4 sm:$0xff]   ;;  %v5633_v28 = vld [vmem:[#allocation5 + $0x8dc] ss:$24 sps:$4 sm:$0xff]  }
 0x17b   :  { %4227 = vmatprep.mubr.bf16.mxu0 %v6145_v47  ;;  %v5568_v47 = vld [vmem:[#allocation5 + $0x6d0] ss:$24 sps:$4 sm:$0xff]  }
 0x17c   :  { %3952 = vmatpush1.bf16.msra.mxu1 %v5547_v29  ;;  %v5636_v29 = vld [vmem:[#allocation5 + $0x8e4] ss:$24 sps:$4 sm:$0xff]  }
 0x17d   :  { %4198 = vmatpush1.bf16.msra.mxu0 %v5550_v30  ;;  %3953 = vmatprep.subr.bf16.mxu1 %v5555_v26  ;;  %v5631_v30 = vld [vmem:[#allocation5 + $0x8d8] ss:$24 sps:$4 sm:$0xff]  }
 0x17e   :  { %4199 = vmatprep.subr.bf16.mxu0 %v5558_v31  ;;  %v5634_v26 = vld [vmem:[#allocation5 + $0x8e0] ss:$24 sps:$4 sm:$0xff]   ;;  %v5639_v31 = vld [vmem:[#allocation5 + $0x90c] ss:$24 sps:$4 sm:$0xff]  }
 0x180   :  { %3954 = vmatpush1.bf16.msra.mxu1 %v5553_v32  ;;  %v5642_v32 = vld [vmem:[#allocation5 + $0x914] ss:$24 sps:$4 sm:$0xff]  }
 0x181   :  { %4200 = vmatpush1.bf16.msra.mxu0 %v5556_v35  ;;  %3955 = vmatprep.subr.bf16.mxu1 %v5561_v36  ;;  %v5637_v35 = vld [vmem:[#allocation5 + $0x908] ss:$24 sps:$4 sm:$0xff]  }
 0x182   :  { %4201 = vmatprep.subr.bf16.mxu0 %v5564_v56  ;;  %v5640_v36 = vld [vmem:[#allocation5 + $0x910] ss:$24 sps:$4 sm:$0xff]   ;;  %v5645_v56 = vld [vmem:[#allocation5 + $0x93c] ss:$24 sps:$4 sm:$0xff]  }
 0x184   :  { %3956 = vmatpush1.bf16.msra.mxu1 %v5559_v37  ;;  %v5648_v37 = vld [vmem:[#allocation5 + $0x944] ss:$24 sps:$4 sm:$0xff]  }
 0x185   :  { %4202 = vmatpush1.bf16.msra.mxu0 %v5562_v38  ;;  %3957 = vmatprep.subr.bf16.mxu1 %v5567_v39  ;;  %v5643_v38 = vld [vmem:[#allocation5 + $0x938] ss:$24 sps:$4 sm:$0xff]  }
 0x186   :  { %4203 = vmatprep.subr.bf16.mxu0 %v5570_v40  ;;  %v5646_v39 = vld [vmem:[#allocation5 + $0x940] ss:$24 sps:$4 sm:$0xff]   ;;  %v5651_v40 = vld [vmem:[#allocation5 + $0x96c] ss:$24 sps:$4 sm:$0xff]  }
 0x188   :  { %3958 = vmatpush1.bf16.msra.mxu1 %v5565_v41  ;;  %v5654_v41 = vld [vmem:[#allocation5 + $0x974] ss:$24 sps:$4 sm:$0xff]  }
 0x189   :  { %4204 = vmatpush1.bf16.msra.mxu0 %v5568_v47  ;;  %3959 = vmatprep.subr.bf16.mxu1 %v5573_v44  ;;  %v5649_v47 = vld [vmem:[#allocation5 + $0x968] ss:$24 sps:$4 sm:$0xff]  }
 0x18a   :  { %4205 = vmatprep.subr.bf16.mxu0 %v5576_v45  ;;  %v5652_v44 = vld [vmem:[#allocation5 + $0x970] ss:$24 sps:$4 sm:$0xff]   ;;  %v5657_v45 = vld [vmem:[#allocation5 + $0x99c] ss:$24 sps:$4 sm:$0xff]  }
 0x18c   :  { %3960 = vmatpush1.bf16.msra.mxu1 %v5571_v46  ;;  %v5655_v46 = vld [vmem:[#allocation5 + $0x998] ss:$24 sps:$4 sm:$0xff]  }
 0x18d   :  { %4206 = vmatpush1.bf16.msra.mxu0 %v5574_v14  ;;  %3961 = vmatprep.subr.bf16.mxu1 %v5579_v50  ;;  %v5658_v14 = vld [vmem:[#allocation5 + $0x9a0] ss:$24 sps:$4 sm:$0xff]   ;;  %v5663_v50 = vld [vmem:[#allocation5 + $0x9cc] ss:$24 sps:$4 sm:$0xff]  }
 0x18e   :  { %4207 = vmatprep.subr.bf16.mxu0 %v5582_v51  ;;  %v5666_v51 = vld [vmem:[#allocation5 + $0x9d4] ss:$24 sps:$4 sm:$0xff]  }
 0x190   :  { %3962 = vmatpush1.bf16.msra.mxu1 %v5577_v52  ;;  %v5661_v52 = vld [vmem:[#allocation5 + $0x9c8] ss:$24 sps:$4 sm:$0xff]  }
 0x191   :  { %4208 = vmatpush1.bf16.msra.mxu0 %v5580_v53  ;;  %3963 = vmatprep.subr.bf16.mxu1 %v5585_v54  ;;  %v713_v53 = vsub.s32 0, %v6082_v43  ;;  %v6178_v54 = vld [vmem:[#allocation7] sm:$0x3f] }
 0x192   :  { %4209 = vmatprep.subr.bf16.mxu0 %v5588_v55  ;;  %v717_v55 = vsub.s32 1, %v6082_v43 }
 0x194   :  { %3964 = vmatpush1.bf16.msra.mxu1 %v5583_v57  ;;  %v5669_v57 = vld [vmem:[#allocation5 + $0x9fc] ss:$24 sps:$4 sm:$0xff]  }
 0x195   :  { %4210 = vmatpush1.bf16.msra.mxu0 %v5586_v58  ;;  %3965 = vmatprep.subr.bf16.mxu1 %v5591_v59  ;;  %v5672_v58 = vld [vmem:[#allocation5 + $0xa04] ss:$24 sps:$4 sm:$0xff]   ;;  %v714_v59 = vrot.slane %v6178_v54, %v713_v53  ;;  %v5721_v53 = vld [vmem:[#allocation5 + $0xba8] ss:$24 sps:$4 sm:$0xff]  }
 0x196   :  { %4211 = vmatprep.subr.bf16.mxu0 %v5594_v0  ;;  %v718_v0 = vrot.slane %v6178_v54, %v717_v55  ;;  %v5729_v55 = vld [vmem:[#allocation5 + $0xbdc] ss:$24 sps:$4 sm:$0xff]  }
 0x198   :  { %3966 = vmatpush1.bf16.msra.mxu1 %v5589_v1  ;;  %v5667_v1 = vld [vmem:[#allocation5 + $0x9f8] ss:$24 sps:$4 sm:$0xff]  }
 0x199   :  { %4212 = vmatpush1.bf16.msra.mxu0 %v5592_v2  ;;  %3967 = vmatprep.subr.bf16.mxu1 %v5597_v3  ;;  %v5670_v2 = vld [vmem:[#allocation5 + $0xa00] ss:$24 sps:$4 sm:$0xff]   ;;  %v5675_v3 = vld [vmem:[#allocation5 + $0xa2c] ss:$24 sps:$4 sm:$0xff]  }
 0x19a   :  { %4213 = vmatprep.subr.bf16.mxu0 %v5600_v5  ;;  %v5678_v5 = vld [vmem:[#allocation5 + $0xa34] ss:$24 sps:$4 sm:$0xff]  }
 0x19c   :  { %3968 = vmatpush1.bf16.msra.mxu1 %v5595_v33 }
 0x19d   :  { %4214 = vmatpush1.bf16.msra.mxu0 %v5598_v6  ;;  %3969 = vmatprep.subr.bf16.mxu1 %v5603_v34 }
 0x19e   :  { %4215 = vmatprep.subr.bf16.mxu0 %v5606_v7 }
 0x1a0   :  { %3970 = vmatpush1.bf16.msra.mxu1 %v5601_v8 }
 0x1a1   :  { %4216 = vmatpush1.bf16.msra.mxu0 %v5604_v9  ;;  %3971 = vmatprep.subr.bf16.mxu1 %v5609_v10 }
 0x1a2   :  { %4217 = vmatprep.subr.bf16.mxu0 %v5612_v11 }
 0x1a4   :  { %3972 = vmatpush1.bf16.msra.mxu1 %v5607_v12  ;;  %v5673_v12 = vld [vmem:[#allocation5 + $0xa28] ss:$24 sps:$4 sm:$0xff]  }
 0x1a5   :  { %4218 = vmatpush1.bf16.msra.mxu0 %v5610_v13  ;;  %3973 = vmatprep.subr.bf16.mxu1 %v5615_v15  ;;  %v5676_v13 = vld [vmem:[#allocation5 + $0xa30] ss:$24 sps:$4 sm:$0xff]  }
 0x1a6   :  { %4219 = vmatprep.subr.bf16.mxu0 %v5618_v16 }
 0x1a8   :  { %3974 = vmatpush1.bf16.msra.mxu1 %v5613_v61 }
 0x1a9   :  { %4220 = vmatpush1.bf16.msra.mxu0 %v5616_v17  ;;  %3975 = vmatprep.subr.bf16.mxu1 %v5621_v18  ;;  %v5681_v17 = vld [vmem:[#allocation5 + $0xa5c] ss:$24 sps:$4 sm:$0xff]  }
 0x1aa   :  { %4221 = vmatprep.subr.bf16.mxu0 %v5624_v19  ;;  %v5684_v18 = vld [vmem:[#allocation5 + $0xa64] ss:$24 sps:$4 sm:$0xff]  }
 0x1ac   :  { %3976 = vmatpush1.bf16.msra.mxu1 %v5619_v22 }
 0x1ad   :  { %4222 = vmatpush1.bf16.msra.mxu0 %v5622_v23  ;;  %3977 = vmatprep.subr.bf16.mxu1 %v5627_v24  ;;  %v5679_v23 = vld [vmem:[#allocation5 + $0xa58] ss:$24 sps:$4 sm:$0xff]  }
 0x1ae   :  { %4223 = vmatprep.subr.bf16.mxu0 %v5630_v20  ;;  %v5682_v24 = vld [vmem:[#allocation5 + $0xa60] ss:$24 sps:$4 sm:$0xff]   ;;  %v5687_v20 = vld [vmem:[#allocation5 + $0xa8c] ss:$24 sps:$4 sm:$0xff]  }
 0x1b0   :  { %3978 = vmatpush1.bf16.msra.mxu1 %v5625_v25  ;;  %v5690_v25 = vld [vmem:[#allocation5 + $0xa94] ss:$24 sps:$4 sm:$0xff]  }
 0x1b1   :  { %4224 = vmatpush1.bf16.msra.mxu0 %v5628_v27  ;;  %3979 = vmatprep.subr.bf16.mxu1 %v5633_v28  ;;  %v5685_v27 = vld [vmem:[#allocation5 + $0xa88] ss:$24 sps:$4 sm:$0xff]  }
 0x1b2   :  { %4225 = vmatprep.subr.bf16.mxu0 %v5636_v29  ;;  %v5688_v28 = vld [vmem:[#allocation5 + $0xa90] ss:$24 sps:$4 sm:$0xff]   ;;  %v5693_v29 = vld [vmem:[#allocation5 + $0xabc] ss:$24 sps:$4 sm:$0xff]  }
 0x1b4   :  { %3980 = vmatpush1.bf16.msra.mxu1 %v5631_v30  ;;  %v5696_v30 = vld [vmem:[#allocation5 + $0xac4] ss:$24 sps:$4 sm:$0xff]  }
 0x1b5   :  { %4226 = vmatpush1.bf16.msra.mxu0 %v5634_v26  ;;  %3990 = vmatprep.subr.bf16.mxu1 %v5639_v31  ;;  %v5691_v26 = vld [vmem:[#allocation5 + $0xab8] ss:$24 sps:$4 sm:$0xff]  }
 0x1b6   :  { %4236 = vmatprep.subr.bf16.mxu0 %v5642_v32  ;;  %v5694_v31 = vld [vmem:[#allocation5 + $0xac0] ss:$24 sps:$4 sm:$0xff]   ;;  %v5699_v32 = vld [vmem:[#allocation5 + $0xaec] ss:$24 sps:$4 sm:$0xff]  }
 0x1b7   :  { %3982 = vmatmul.mubr.bf16.vlgmr.msra.gmra.mrb[4].mxu1 %v6155_v62 }
 0x1b8   :  { %4228 = vmatmul.mubr.bf16.vlgmr.msra.gmra.mrb[4].mxu0 %v6155_v62  ;;  %3991 = vmatpush1.bf16.msra.mxu1 %v5637_v35  ;;  %v5660_v62 = vld [vmem:[#allocation5 + $0x9a4] ss:$24 sps:$4 sm:$0xff]   ;;  %v5702_v35 = vld [vmem:[#allocation5 + $0xaf4] ss:$24 sps:$4 sm:$0xff]  }
 0x1b9   :  { %4237 = vmatpush1.bf16.msra.mxu0 %v5640_v36  ;;  %3992 = vmatprep.subr.bf16.mxu1 %v5645_v56  ;;  %v5697_v36 = vld [vmem:[#allocation5 + $0xae8] ss:$24 sps:$4 sm:$0xff]  }
 0x1ba   :  { %4238 = vmatprep.subr.bf16.mxu0 %v5648_v37  ;;  %4022 = vmatprep.mubr.bf16.mxu1 %v6096_v4  ;;  %v5700_v56 = vld [vmem:[#allocation5 + $0xaf0] ss:$24 sps:$4 sm:$0xff]   ;;  %v5705_v37 = vld [vmem:[#allocation5 + $0xb1c] ss:$24 sps:$4 sm:$0xff]  }
 0x1bb   :  { %4268 = vmatprep.mubr.bf16.mxu0 %v6096_v4  ;;  %v5664_v4 = vld [vmem:[#allocation5 + $0x9d0] ss:$24 sps:$4 sm:$0xff]  }
 0x1bc   :  { %3993 = vmatpush1.bf16.msra.mxu1 %v5643_v38  ;;  %v5708_v38 = vld [vmem:[#allocation5 + $0xb24] ss:$24 sps:$4 sm:$0xff]  }
 0x1bd   :  { %4239 = vmatpush1.bf16.msra.mxu0 %v5646_v39  ;;  %3994 = vmatprep.subr.bf16.mxu1 %v5651_v40  ;;  %v5703_v39 = vld [vmem:[#allocation5 + $0xb18] ss:$24 sps:$4 sm:$0xff]  }
 0x1be   :  { %4240 = vmatprep.subr.bf16.mxu0 %v5654_v41  ;;  %v5706_v40 = vld [vmem:[#allocation5 + $0xb20] ss:$24 sps:$4 sm:$0xff]   ;;  %v5711_v41 = vld [vmem:[#allocation5 + $0xb4c] ss:$24 sps:$4 sm:$0xff]  }
 0x1c0   :  { %3995 = vmatpush1.bf16.msra.mxu1 %v5649_v47  ;;  %v5714_v47 = vld [vmem:[#allocation5 + $0xb54] ss:$24 sps:$4 sm:$0xff]  }
 0x1c1   :  { %4241 = vmatpush1.bf16.msra.mxu0 %v5652_v44  ;;  %3996 = vmatprep.subr.bf16.mxu1 %v5657_v45  ;;  %v5709_v44 = vld [vmem:[#allocation5 + $0xb48] ss:$24 sps:$4 sm:$0xff]  }
 0x1c2   :  { %4242 = vmatprep.subr.bf16.mxu0 %v5660_v62  ;;  %v5712_v45 = vld [vmem:[#allocation5 + $0xb50] ss:$24 sps:$4 sm:$0xff]   ;;  %v5717_v62 = vld [vmem:[#allocation5 + $0xb7c] ss:$24 sps:$4 sm:$0xff]  }
 0x1c4   :  { %3997 = vmatpush1.bf16.msra.mxu1 %v5655_v46  ;;  %v5720_v46 = vld [vmem:[#allocation5 + $0xb84] ss:$24 sps:$4 sm:$0xff]  }
 0x1c5   :  { %4243 = vmatpush1.bf16.msra.mxu0 %v5658_v14  ;;  %3998 = vmatprep.subr.bf16.mxu1 %v5663_v50  ;;  %v5715_v14 = vld [vmem:[#allocation5 + $0xb78] ss:$24 sps:$4 sm:$0xff]  }
 0x1c6   :  { %4244 = vmatprep.subr.bf16.mxu0 %v5666_v51  ;;  %v5718_v50 = vld [vmem:[#allocation5 + $0xb80] ss:$24 sps:$4 sm:$0xff]   ;;  %v5723_v51 = vld [vmem:[#allocation5 + $0xbac] ss:$24 sps:$4 sm:$0xff]  }
 0x1c8   :  { %3999 = vmatpush1.bf16.msra.mxu1 %v5661_v52  ;;  %v5726_v52 = vld [vmem:[#allocation5 + $0xbb4] ss:$24 sps:$4 sm:$0xff]  }
 0x1c9   :  { %4245 = vmatpush1.bf16.msra.mxu0 %v5664_v4  ;;  %4000 = vmatprep.subr.bf16.mxu1 %v5669_v57  ;;  %v5724_v4 = vld [vmem:[#allocation5 + $0xbb0] ss:$24 sps:$4 sm:$0xff]   ;;  %v5732_v57 = vld [vmem:[#allocation5 + $0xbe4] ss:$24 sps:$4 sm:$0xff]  }
 0x1ca   :  { %4246 = vmatprep.subr.bf16.mxu0 %v5672_v58  ;;  %v3737_v33 = vpop.f32.mrb[0].mxu1  ;;  %v5727_v58 = vld [vmem:[#allocation5 + $0xbd8] ss:$24 sps:$4 sm:$0xff]  }
 0x1cb   :  { %v3860_v6 = vpop.f32.mrb[0].mxu0  ;;  %v4987_v34 = vadd.f32 %v3737_v33, %v714_v59  ;;  %v3739_v7 = vpop.f32.mrb[1].mxu1  ;;  %v5730_v59 = vld [vmem:[#allocation5 + $0xbe0] ss:$24 sps:$4 sm:$0xff]   ;;  %v5744_v33 = vld [vmem:[#allocation5 + $0xc44] ss:$24 sps:$4 sm:$0xff]  }
 0x1cc   :  { %v3862_v8 = vpop.f32.mrb[1].mxu0  ;;  %v4989_v9 = vadd.f32 %v3739_v7, %v718_v0  ;;  %v3741_v10 = vpop.f32.mrb[2].mxu1  ;;  %4001 = vmatpush1.bf16.msra.mxu1 %v5667_v1  ;;  %v5735_v0 = vld [vmem:[#allocation5 + $0xc0c] ss:$24 sps:$4 sm:$0xff]  }
 0x1cd   :  { %v3864_v11 = vpop.f32.mrb[2].mxu0  ;;  %4247 = vmatpush1.bf16.msra.mxu0 %v5670_v2  ;;  %v6183_v15 = vadd.f32 %v4987_v34, %v3860_v6  ;;  %v3742_v16 = vpop.f32.mrb[3].mxu1  ;;  %4002 = vmatprep.subr.bf16.mxu1 %v5675_v3  ;;  %v5738_v1 = vld [vmem:[#allocation5 + $0xc14] ss:$24 sps:$4 sm:$0xff]   ;;  %v5733_v2 = vld [vmem:[#allocation5 + $0xc08] ss:$24 sps:$4 sm:$0xff]  }
 0x1ce   :  { %v3865_v61 = vpop.f32.mrb[3].mxu0  ;;  %4248 = vmatprep.subr.bf16.mxu0 %v5678_v5  ;;  %v6185_v19 = vadd.f32 %v4989_v9, %v3862_v8  ;;  %v5736_v3 = vld [vmem:[#allocation5 + $0xc10] ss:$24 sps:$4 sm:$0xff]   ;;  %v5741_v5 = vld [vmem:[#allocation5 + $0xc3c] ss:$24 sps:$4 sm:$0xff]  }
 0x1cf   :  { %v5739_v6 = vld [vmem:[#allocation5 + $0xc38] ss:$24 sps:$4 sm:$0xff]   ;;  %v5747_v7 = vld [vmem:[#allocation5 + $0xc6c] ss:$24 sps:$4 sm:$0xff]   ;;  %v5745_v9 = vld [vmem:[#allocation5 + $0xc68] ss:$24 sps:$4 sm:$0xff]  }
 0x1d0   :  { %v4365_v22 = vcombine.low %v6183_v15, %v6185_v19  ;;  %4003 = vmatpush1.bf16.msra.mxu1 %v5673_v12  ;;  %v5742_v34 = vld [vmem:[#allocation5 + $0xc40] ss:$24 sps:$4 sm:$0xff]   ;;  %v5750_v8 = vld [vmem:[#allocation5 + $0xc74] ss:$24 sps:$4 sm:$0xff]   ;;  %v5748_v10 = vld [vmem:[#allocation5 + $0xc70] ss:$24 sps:$4 sm:$0xff]  }
 0x1d1   :  { %4249 = vmatpush1.bf16.msra.mxu0 %v5676_v13  ;;  %4004 = vmatprep.subr.bf16.mxu1 %v5681_v17  ;;  %v5753_v11 = vld [vmem:[#allocation5 + $0xc9c] ss:$24 sps:$4 sm:$0xff]   ;;  %v5751_v12 = vld [vmem:[#allocation5 + $0xc98] ss:$24 sps:$4 sm:$0xff]   ;;  %v5759_v16 = vld [vmem:[#allocation5 + $0xccc] ss:$24 sps:$4 sm:$0xff]  }
 0x1d2   :  { %4250 = vmatprep.subr.bf16.mxu0 %v5684_v18  ;;  %v5754_v13 = vld [vmem:[#allocation5 + $0xca0] ss:$24 sps:$4 sm:$0xff]   ;;  %v5762_v61 = vld [vmem:[#allocation5 + $0xcd4] ss:$24 sps:$4 sm:$0xff]  }
 0x1d3   :  { %v5757_v17 = vld [vmem:[#allocation5 + $0xcc8] ss:$24 sps:$4 sm:$0xff]   ;;  %v5765_v18 = vld [vmem:[#allocation5 + $0xcfc] ss:$24 sps:$4 sm:$0xff]  }
 0x1d4   :  { %4005 = vmatpush1.bf16.msra.mxu1 %v5679_v23  ;;  %v5768_v23 = vld [vmem:[#allocation5 + $0xd04] ss:$24 sps:$4 sm:$0xff]  }
 0x1d5   :  { %4251 = vmatpush1.bf16.msra.mxu0 %v5682_v24  ;;  %4006 = vmatprep.subr.bf16.mxu1 %v5687_v20  ;;  %v5763_v24 = vld [vmem:[#allocation5 + $0xcf8] ss:$24 sps:$4 sm:$0xff]  }
 0x1d6   :  { %4252 = vmatprep.subr.bf16.mxu0 %v5690_v25  ;;  %v5766_v20 = vld [vmem:[#allocation5 + $0xd00] ss:$24 sps:$4 sm:$0xff]   ;;  %v5771_v25 = vld [vmem:[#allocation5 + $0xd2c] ss:$24 sps:$4 sm:$0xff]  }
 0x1d8   :  { %4007 = vmatpush1.bf16.msra.mxu1 %v5685_v27  ;;  %v5774_v27 = vld [vmem:[#allocation5 + $0xd34] ss:$24 sps:$4 sm:$0xff]  }
 0x1d9   :  { %4253 = vmatpush1.bf16.msra.mxu0 %v5688_v28  ;;  %4008 = vmatprep.subr.bf16.mxu1 %v5693_v29  ;;  %v5769_v28 = vld [vmem:[#allocation5 + $0xd28] ss:$24 sps:$4 sm:$0xff]  }
 0x1da   :  { %4254 = vmatprep.subr.bf16.mxu0 %v5696_v30  ;;  %v5772_v29 = vld [vmem:[#allocation5 + $0xd30] ss:$24 sps:$4 sm:$0xff]   ;;  %v5777_v30 = vld [vmem:[#allocation5 + $0xd5c] ss:$24 sps:$4 sm:$0xff]  }
 0x1dc   :  { %4009 = vmatpush1.bf16.msra.mxu1 %v5691_v26  ;;  %v5780_v26 = vld [vmem:[#allocation5 + $0xd64] ss:$24 sps:$4 sm:$0xff]  }
 0x1dd   :  { %4255 = vmatpush1.bf16.msra.mxu0 %v5694_v31  ;;  %4010 = vmatprep.subr.bf16.mxu1 %v5699_v32  ;;  %v5775_v31 = vld [vmem:[#allocation5 + $0xd58] ss:$24 sps:$4 sm:$0xff]  }
 0x1de   :  { %4256 = vmatprep.subr.bf16.mxu0 %v5702_v35  ;;  %v5778_v32 = vld [vmem:[#allocation5 + $0xd60] ss:$24 sps:$4 sm:$0xff]   ;;  %v5783_v35 = vld [vmem:[#allocation5 + $0xd8c] ss:$24 sps:$4 sm:$0xff]  }
 0x1e0   :  { %4011 = vmatpush1.bf16.msra.mxu1 %v5697_v36  ;;  %v5786_v36 = vld [vmem:[#allocation5 + $0xd94] ss:$24 sps:$4 sm:$0xff]  }
 0x1e1   :  { %4257 = vmatpush1.bf16.msra.mxu0 %v5700_v56  ;;  %4012 = vmatprep.subr.bf16.mxu1 %v5705_v37  ;;  %v5781_v56 = vld [vmem:[#allocation5 + $0xd88] ss:$24 sps:$4 sm:$0xff]  }
 0x1e2   :  { %4258 = vmatprep.subr.bf16.mxu0 %v5708_v38  ;;  %v5784_v37 = vld [vmem:[#allocation5 + $0xd90] ss:$24 sps:$4 sm:$0xff]   ;;  %v5789_v38 = vld [vmem:[#allocation5 + $0xdbc] ss:$24 sps:$4 sm:$0xff]  }
 0x1e4   :  { %4013 = vmatpush1.bf16.msra.mxu1 %v5703_v39  ;;  %v5792_v39 = vld [vmem:[#allocation5 + $0xdc4] ss:$24 sps:$4 sm:$0xff]  }
 0x1e5   :  { %4259 = vmatpush1.bf16.msra.mxu0 %v5706_v40  ;;  %4014 = vmatprep.subr.bf16.mxu1 %v5711_v41  ;;  %v5787_v40 = vld [vmem:[#allocation5 + $0xdb8] ss:$24 sps:$4 sm:$0xff]  }
 0x1e6   :  { %4260 = vmatprep.subr.bf16.mxu0 %v5714_v47  ;;  %v5790_v41 = vld [vmem:[#allocation5 + $0xdc0] ss:$24 sps:$4 sm:$0xff]   ;;  %v5795_v47 = vld [vmem:[#allocation5 + $0xdec] ss:$24 sps:$4 sm:$0xff]  }
 0x1e8   :  { %4015 = vmatpush1.bf16.msra.mxu1 %v5709_v44  ;;  %v5798_v44 = vld [vmem:[#allocation5 + $0xdf4] ss:$24 sps:$4 sm:$0xff]  }
 0x1e9   :  { %4261 = vmatpush1.bf16.msra.mxu0 %v5712_v45  ;;  %4016 = vmatprep.subr.bf16.mxu1 %v5717_v62  ;;  %v5793_v45 = vld [vmem:[#allocation5 + $0xde8] ss:$24 sps:$4 sm:$0xff]  }
 0x1ea   :  { %4262 = vmatprep.subr.bf16.mxu0 %v5720_v46  ;;  %v5796_v62 = vld [vmem:[#allocation5 + $0xdf0] ss:$24 sps:$4 sm:$0xff]   ;;  %v5801_v46 = vld [vmem:[#allocation5 + $0xe1c] ss:$24 sps:$4 sm:$0xff]  }
 0x1ec   :  { %4017 = vmatpush1.bf16.msra.mxu1 %v5715_v14  ;;  %v5804_v14 = vld [vmem:[#allocation5 + $0xe24] ss:$24 sps:$4 sm:$0xff]  }
 0x1ed   :  { %4263 = vmatpush1.bf16.msra.mxu0 %v5718_v50  ;;  %4018 = vmatprep.subr.bf16.mxu1 %v5723_v51  ;;  %v5799_v50 = vld [vmem:[#allocation5 + $0xe18] ss:$24 sps:$4 sm:$0xff]  }
 0x1ee   :  { %4264 = vmatprep.subr.bf16.mxu0 %v5726_v52  ;;  %v5802_v51 = vld [vmem:[#allocation5 + $0xe20] ss:$24 sps:$4 sm:$0xff]   ;;  %v5807_v52 = vld [vmem:[#allocation5 + $0xe4c] ss:$24 sps:$4 sm:$0xff]  }
 0x1f0   :  { %4019 = vmatpush1.bf16.msra.mxu1 %v5721_v53  ;;  %v5810_v53 = vld [vmem:[#allocation5 + $0xe54] ss:$24 sps:$4 sm:$0xff]  }
 0x1f1   :  { %4265 = vmatpush1.bf16.msra.mxu0 %v5724_v4  ;;  %4020 = vmatprep.subr.bf16.mxu1 %v5729_v55  ;;  %v5805_v4 = vld [vmem:[#allocation5 + $0xe48] ss:$24 sps:$4 sm:$0xff]  }
 0x1f2   :  { %4266 = vmatprep.subr.bf16.mxu0 %v5732_v57  ;;  %v5808_v55 = vld [vmem:[#allocation5 + $0xe50] ss:$24 sps:$4 sm:$0xff]   ;;  %v5813_v57 = vld [vmem:[#allocation5 + $0xe7c] ss:$24 sps:$4 sm:$0xff]  }
 0x1f4   :  { %4021 = vmatpush1.bf16.msra.mxu1 %v5727_v58  ;;  %v5816_v58 = vld [vmem:[#allocation5 + $0xe84] ss:$24 sps:$4 sm:$0xff]  }
 0x1f5   :  { %4267 = vmatpush1.bf16.msra.mxu0 %v5730_v59  ;;  %4031 = vmatprep.subr.bf16.mxu1 %v5735_v0  ;;  %v5811_v59 = vld [vmem:[#allocation5 + $0xe78] ss:$24 sps:$4 sm:$0xff]  }
 0x1f6   :  { %4277 = vmatprep.subr.bf16.mxu0 %v5738_v1  ;;  %v5814_v0 = vld [vmem:[#allocation5 + $0xe80] ss:$24 sps:$4 sm:$0xff]   ;;  %v5819_v1 = vld [vmem:[#allocation5 + $0xeac] ss:$24 sps:$4 sm:$0xff]  }
 0x1f7   :  { %4023 = vmatmul.mubr.bf16.vlgmr.msra.gmra.mrb[4].mxu1 %v6106_v21 }
 0x1f8   :  { %4269 = vmatmul.mubr.bf16.vlgmr.msra.gmra.mrb[4].mxu0 %v6106_v21  ;;  %4032 = vmatpush1.bf16.msra.mxu1 %v5733_v2  ;;  %v5756_v21 = vld [vmem:[#allocation5 + $0xca4] ss:$24 sps:$4 sm:$0xff]   ;;  %v5822_v2 = vld [vmem:[#allocation5 + $0xeb4] ss:$24 sps:$4 sm:$0xff]  }
 0x1f9   :  { %4278 = vmatpush1.bf16.msra.mxu0 %v5736_v3  ;;  %4033 = vmatprep.subr.bf16.mxu1 %v5741_v5  ;;  %v5817_v3 = vld [vmem:[#allocation5 + $0xea8] ss:$24 sps:$4 sm:$0xff]  }
 0x1fa   :  { %4279 = vmatprep.subr.bf16.mxu0 %v5744_v33  ;;  %4063 = vmatprep.mubr.bf16.mxu1 %v6121_v60  ;;  %v5820_v5 = vld [vmem:[#allocation5 + $0xeb0] ss:$24 sps:$4 sm:$0xff]   ;;  %v5825_v33 = vld [vmem:[#allocation5 + $0xedc] ss:$24 sps:$4 sm:$0xff]  }
 0x1fb   :  { %4309 = vmatprep.mubr.bf16.mxu0 %v6121_v60  ;;  %v5760_v60 = vld [vmem:[#allocation5 + $0xcd0] ss:$24 sps:$4 sm:$0xff]  }
 0x1fc   :  { %4034 = vmatpush1.bf16.msra.mxu1 %v5739_v6  ;;  %v5828_v6 = vld [vmem:[#allocation5 + $0xee4] ss:$24 sps:$4 sm:$0xff]  }
 0x1fd   :  { %4280 = vmatpush1.bf16.msra.mxu0 %v5742_v34  ;;  %4035 = vmatprep.subr.bf16.mxu1 %v5747_v7  ;;  %v5823_v34 = vld [vmem:[#allocation5 + $0xed8] ss:$24 sps:$4 sm:$0xff]  }
 0x1fe   :  { %4281 = vmatprep.subr.bf16.mxu0 %v5750_v8  ;;  %v5826_v7 = vld [vmem:[#allocation5 + $0xee0] ss:$24 sps:$4 sm:$0xff]   ;;  %v5831_v8 = vld [vmem:[#allocation5 + $0xf0c] ss:$24 sps:$4 sm:$0xff]  }
 0x200   :  { %4036 = vmatpush1.bf16.msra.mxu1 %v5745_v9  ;;  %v5834_v9 = vld [vmem:[#allocation5 + $0xf14] ss:$24 sps:$4 sm:$0xff]  }
 0x201   :  { %4282 = vmatpush1.bf16.msra.mxu0 %v5748_v10  ;;  %4037 = vmatprep.subr.bf16.mxu1 %v5753_v11  ;;  %v5829_v10 = vld [vmem:[#allocation5 + $0xf08] ss:$24 sps:$4 sm:$0xff]  }
 0x202   :  { %4283 = vmatprep.subr.bf16.mxu0 %v5756_v21  ;;  %v5832_v11 = vld [vmem:[#allocation5 + $0xf10] ss:$24 sps:$4 sm:$0xff]   ;;  %v5837_v21 = vld [vmem:[#allocation5 + $0xf3c] ss:$24 sps:$4 sm:$0xff]  }
 0x204   :  { %4038 = vmatpush1.bf16.msra.mxu1 %v5751_v12  ;;  %v5840_v12 = vld [vmem:[#allocation5 + $0xf44] ss:$24 sps:$4 sm:$0xff]  }
 0x205   :  { %4284 = vmatpush1.bf16.msra.mxu0 %v5754_v13  ;;  %4039 = vmatprep.subr.bf16.mxu1 %v5759_v16  ;;  %v5835_v13 = vld [vmem:[#allocation5 + $0xf38] ss:$24 sps:$4 sm:$0xff]  }
 0x206   :  { %4285 = vmatprep.subr.bf16.mxu0 %v5762_v61  ;;  %v5838_v16 = vld [vmem:[#allocation5 + $0xf40] ss:$24 sps:$4 sm:$0xff]   ;;  %v5843_v61 = vld [vmem:[#allocation5 + $0xf6c] ss:$24 sps:$4 sm:$0xff]  }
 0x208   :  { %4040 = vmatpush1.bf16.msra.mxu1 %v5757_v17  ;;  %v5846_v17 = vld [vmem:[#allocation5 + $0xf74] ss:$24 sps:$4 sm:$0xff]  }
 0x209   :  { %4286 = vmatpush1.bf16.msra.mxu0 %v5760_v60  ;;  %4041 = vmatprep.subr.bf16.mxu1 %v5765_v18  ;;  %v5841_v60 = vld [vmem:[#allocation5 + $0xf68] ss:$24 sps:$4 sm:$0xff]  }
 0x20a   :  { %4287 = vmatprep.subr.bf16.mxu0 %v5768_v23  ;;  %v5844_v18 = vld [vmem:[#allocation5 + $0xf70] ss:$24 sps:$4 sm:$0xff]   ;;  %v5849_v23 = vld [vmem:[#allocation5 + $0xf9c] ss:$24 sps:$4 sm:$0xff]  }
 0x20c   :  { %4042 = vmatpush1.bf16.msra.mxu1 %v5763_v24  ;;  %v5847_v24 = vld [vmem:[#allocation5 + $0xf98] ss:$24 sps:$4 sm:$0xff]  }
 0x20d   :  { %4288 = vmatpush1.bf16.msra.mxu0 %v5766_v20  ;;  %4043 = vmatprep.subr.bf16.mxu1 %v5771_v25  ;;  %v5850_v20 = vld [vmem:[#allocation5 + $0xfa0] ss:$24 sps:$4 sm:$0xff]   ;;  %v5855_v25 = vld [vmem:[#allocation5 + $0xfcc] ss:$24 sps:$4 sm:$0xff]  }
 0x20e   :  { %4289 = vmatprep.subr.bf16.mxu0 %v5774_v27  ;;  %v5858_v27 = vld [vmem:[#allocation5 + $0xfd4] ss:$24 sps:$4 sm:$0xff]  }
 0x210   :  { %4044 = vmatpush1.bf16.msra.mxu1 %v5769_v28  ;;  %v5853_v28 = vld [vmem:[#allocation5 + $0xfc8] ss:$24 sps:$4 sm:$0xff]  }
 0x211   :  { %4290 = vmatpush1.bf16.msra.mxu0 %v5772_v29  ;;  %4045 = vmatprep.subr.bf16.mxu1 %v5777_v30  ;;  %v5861_v29 = vld [vmem:[#allocation5 + $0xffc] ss:$24 sps:$4 sm:$0xff]  }
 0x212   :  { %4291 = vmatprep.subr.bf16.mxu0 %v5780_v26  ;;  %v5864_v30 = vld [vmem:[#allocation5 + $0x1004] ss:$24 sps:$4 sm:$0xff]   ;;  %v5859_v26 = vld [vmem:[#allocation5 + $0xff8] ss:$24 sps:$4 sm:$0xff]  }
 0x214   :  { %4046 = vmatpush1.bf16.msra.mxu1 %v5775_v31  ;;  %v5862_v31 = vld [vmem:[#allocation5 + $0x1000] ss:$24 sps:$4 sm:$0xff]  }
 0x215   :  { %4292 = vmatpush1.bf16.msra.mxu0 %v5778_v32  ;;  %4047 = vmatprep.subr.bf16.mxu1 %v5783_v35  ;;  %v5867_v32 = vld [vmem:[#allocation5 + $0x102c] ss:$24 sps:$4 sm:$0xff]  }
 0x216   :  { %4293 = vmatprep.subr.bf16.mxu0 %v5786_v36  ;;  %v5870_v35 = vld [vmem:[#allocation5 + $0x1034] ss:$24 sps:$4 sm:$0xff]   ;;  %v5865_v36 = vld [vmem:[#allocation5 + $0x1028] ss:$24 sps:$4 sm:$0xff]  }
 0x218   :  { %4048 = vmatpush1.bf16.msra.mxu1 %v5781_v56  ;;  %v5868_v56 = vld [vmem:[#allocation5 + $0x1030] ss:$24 sps:$4 sm:$0xff]  }
 0x219   :  { %4294 = vmatpush1.bf16.msra.mxu0 %v5784_v37  ;;  %4049 = vmatprep.subr.bf16.mxu1 %v5789_v38  ;;  %v5873_v37 = vld [vmem:[#allocation5 + $0x105c] ss:$24 sps:$4 sm:$0xff]  }
 0x21a   :  { %4295 = vmatprep.subr.bf16.mxu0 %v5792_v39  ;;  %v5876_v38 = vld [vmem:[#allocation5 + $0x1064] ss:$24 sps:$4 sm:$0xff]   ;;  %v5871_v39 = vld [vmem:[#allocation5 + $0x1058] ss:$24 sps:$4 sm:$0xff]  }
 0x21c   :  { %4050 = vmatpush1.bf16.msra.mxu1 %v5787_v40  ;;  %v5874_v40 = vld [vmem:[#allocation5 + $0x1060] ss:$24 sps:$4 sm:$0xff]  }
 0x21d   :  { %4296 = vmatpush1.bf16.msra.mxu0 %v5790_v41  ;;  %4051 = vmatprep.subr.bf16.mxu1 %v5795_v47  ;;  %v5879_v41 = vld [vmem:[#allocation5 + $0x108c] ss:$24 sps:$4 sm:$0xff]  }
 0x21e   :  { %4297 = vmatprep.subr.bf16.mxu0 %v5798_v44  ;;  %v5882_v47 = vld [vmem:[#allocation5 + $0x1094] ss:$24 sps:$4 sm:$0xff]   ;;  %v5877_v44 = vld [vmem:[#allocation5 + $0x1088] ss:$24 sps:$4 sm:$0xff]  }
 0x220   :  { %4052 = vmatpush1.bf16.msra.mxu1 %v5793_v45  ;;  %v5880_v45 = vld [vmem:[#allocation5 + $0x1090] ss:$24 sps:$4 sm:$0xff]  }
 0x221   :  { %4298 = vmatpush1.bf16.msra.mxu0 %v5796_v62  ;;  %4053 = vmatprep.subr.bf16.mxu1 %v5801_v46  ;;  %v5885_v62 = vld [vmem:[#allocation5 + $0x10bc] ss:$24 sps:$4 sm:$0xff]  }
 0x222   :  { %4299 = vmatprep.subr.bf16.mxu0 %v5804_v14  ;;  %v5888_v46 = vld [vmem:[#allocation5 + $0x10c4] ss:$24 sps:$4 sm:$0xff]   ;;  %v5883_v14 = vld [vmem:[#allocation5 + $0x10b8] ss:$24 sps:$4 sm:$0xff]  }
 0x224   :  { %4054 = vmatpush1.bf16.msra.mxu1 %v5799_v50  ;;  %v5886_v50 = vld [vmem:[#allocation5 + $0x10c0] ss:$24 sps:$4 sm:$0xff]  }
 0x225   :  { %4300 = vmatpush1.bf16.msra.mxu0 %v5802_v51  ;;  %4055 = vmatprep.subr.bf16.mxu1 %v5807_v52  ;;  %v5891_v51 = vld [vmem:[#allocation5 + $0x10ec] ss:$24 sps:$4 sm:$0xff]  }
 0x226   :  { %4301 = vmatprep.subr.bf16.mxu0 %v5810_v53  ;;  %v5894_v52 = vld [vmem:[#allocation5 + $0x10f4] ss:$24 sps:$4 sm:$0xff]   ;;  %v5889_v53 = vld [vmem:[#allocation5 + $0x10e8] ss:$24 sps:$4 sm:$0xff]  }
 0x228   :  { %4056 = vmatpush1.bf16.msra.mxu1 %v5805_v4  ;;  %v5892_v4 = vld [vmem:[#allocation5 + $0x10f0] ss:$24 sps:$4 sm:$0xff]  }
 0x229   :  { %4302 = vmatpush1.bf16.msra.mxu0 %v5808_v55  ;;  %4057 = vmatprep.subr.bf16.mxu1 %v5813_v57  ;;  %v5897_v55 = vld [vmem:[#allocation5 + $0x111c] ss:$24 sps:$4 sm:$0xff]  }
 0x22a   :  { %4303 = vmatprep.subr.bf16.mxu0 %v5816_v58  ;;  %v5900_v57 = vld [vmem:[#allocation5 + $0x1124] ss:$24 sps:$4 sm:$0xff]   ;;  %v5895_v58 = vld [vmem:[#allocation5 + $0x1118] ss:$24 sps:$4 sm:$0xff]  }
 0x22c   :  { %4058 = vmatpush1.bf16.msra.mxu1 %v5811_v59  ;;  %v5898_v59 = vld [vmem:[#allocation5 + $0x1120] ss:$24 sps:$4 sm:$0xff]  }
 0x22d   :  { %4304 = vmatpush1.bf16.msra.mxu0 %v5814_v0  ;;  %4059 = vmatprep.subr.bf16.mxu1 %v5819_v1  ;;  %v5903_v0 = vld [vmem:[#allocation5 + $0x114c] ss:$24 sps:$4 sm:$0xff]  }
 0x22e   :  { %4305 = vmatprep.subr.bf16.mxu0 %v5822_v2  ;;  %v5906_v1 = vld [vmem:[#allocation5 + $0x1154] ss:$24 sps:$4 sm:$0xff]   ;;  %v5901_v2 = vld [vmem:[#allocation5 + $0x1148] ss:$24 sps:$4 sm:$0xff]  }
 0x230   :  { %4060 = vmatpush1.bf16.msra.mxu1 %v5817_v3  ;;  %v5904_v3 = vld [vmem:[#allocation5 + $0x1150] ss:$24 sps:$4 sm:$0xff]  }
 0x231   :  { %4306 = vmatpush1.bf16.msra.mxu0 %v5820_v5  ;;  %4061 = vmatprep.subr.bf16.mxu1 %v5825_v33  ;;  %v5909_v5 = vld [vmem:[#allocation5 + $0x117c] ss:$24 sps:$4 sm:$0xff]  }
 0x232   :  { %4307 = vmatprep.subr.bf16.mxu0 %v5828_v6  ;;  %v5912_v33 = vld [vmem:[#allocation5 + $0x1184] ss:$24 sps:$4 sm:$0xff]   ;;  %v5907_v6 = vld [vmem:[#allocation5 + $0x1178] ss:$24 sps:$4 sm:$0xff]  }
 0x234   :  { %4062 = vmatpush1.bf16.msra.mxu1 %v5823_v34  ;;  %v5910_v34 = vld [vmem:[#allocation5 + $0x1180] ss:$24 sps:$4 sm:$0xff]  }
 0x235   :  { %4308 = vmatpush1.bf16.msra.mxu0 %v5826_v7  ;;  %4072 = vmatprep.subr.bf16.mxu1 %v5831_v8  ;;  %v5915_v7 = vld [vmem:[#allocation5 + $0x11ac] ss:$24 sps:$4 sm:$0xff]  }
 0x236   :  { %4318 = vmatprep.subr.bf16.mxu0 %v5834_v9  ;;  %v5918_v8 = vld [vmem:[#allocation5 + $0x11b4] ss:$24 sps:$4 sm:$0xff]   ;;  %v5913_v9 = vld [vmem:[#allocation5 + $0x11a8] ss:$24 sps:$4 sm:$0xff]  }
 0x237   :  { %4064 = vmatmul.mubr.bf16.vlgmr.msra.gmra.mrb[4].mxu1 %v6143_v42 }
 0x238   :  { %4310 = vmatmul.mubr.bf16.vlgmr.msra.gmra.mrb[4].mxu0 %v6143_v42  ;;  %4073 = vmatpush1.bf16.msra.mxu1 %v5829_v10  ;;  %v5852_v42 = vld [vmem:[#allocation5 + $0xfa4] ss:$24 sps:$4 sm:$0xff]   ;;  %v5916_v10 = vld [vmem:[#allocation5 + $0x11b0] ss:$24 sps:$4 sm:$0xff]  }
 0x239   :  { %4319 = vmatpush1.bf16.msra.mxu0 %v5832_v11  ;;  %4074 = vmatprep.subr.bf16.mxu1 %v5837_v21  ;;  %v5921_v11 = vld [vmem:[#allocation5 + $0x11dc] ss:$24 sps:$4 sm:$0xff]  }
 0x23a   :  { %4320 = vmatprep.subr.bf16.mxu0 %v5840_v12  ;;  %4104 = vmatprep.mubr.bf16.mxu1 %v6147_v48  ;;  %v5924_v21 = vld [vmem:[#allocation5 + $0x11e4] ss:$24 sps:$4 sm:$0xff]   ;;  %v5919_v12 = vld [vmem:[#allocation5 + $0x11d8] ss:$24 sps:$4 sm:$0xff]  }
 0x23b   :  { %4350 = vmatprep.mubr.bf16.mxu0 %v6147_v48  ;;  %v5856_v48 = vld [vmem:[#allocation5 + $0xfd0] ss:$24 sps:$4 sm:$0xff]  }
 0x23c   :  { %4075 = vmatpush1.bf16.msra.mxu1 %v5835_v13  ;;  %v5922_v13 = vld [vmem:[#allocation5 + $0x11e0] ss:$24 sps:$4 sm:$0xff]  }
 0x23d   :  { %4321 = vmatpush1.bf16.msra.mxu0 %v5838_v16  ;;  %4076 = vmatprep.subr.bf16.mxu1 %v5843_v61  ;;  %v721_v16 = vsub.s32 2, %v6082_v43  ;;  %v729_v61 = vsub.s32 4, %v6082_v43 }
 0x23e   :  { %4322 = vmatprep.subr.bf16.mxu0 %v5846_v17  ;;  %v725_v17 = vsub.s32 3, %v6082_v43 }
 0x240   :  { %4077 = vmatpush1.bf16.msra.mxu1 %v5841_v60  ;;  %v733_v60 = vsub.s32 5, %v6082_v43 }
 0x241   :  { %4323 = vmatpush1.bf16.msra.mxu0 %v5844_v18  ;;  %4078 = vmatprep.subr.bf16.mxu1 %v5849_v23  ;;  %v722_v18 = vrot.slane %v6178_v54, %v721_v16  ;;  %v730_v23 = vrot.slane %v6178_v54, %v729_v61 }
 0x242   :  { %4324 = vmatprep.subr.bf16.mxu0 %v5852_v42  ;;  %v726_v42 = vrot.slane %v6178_v54, %v725_v17 }
 0x244   :  { %4079 = vmatpush1.bf16.msra.mxu1 %v5847_v24  ;;  %v734_v24 = vrot.slane %v6178_v54, %v733_v60  ;;  %v4373_v54 = vrot.slane %v4365_v22, %v6085_v49 }
 0x245   :  { %4325 = vmatpush1.bf16.msra.mxu0 %v5850_v20  ;;  %4080 = vmatprep.subr.bf16.mxu1 %v5855_v25 }
 0x246   :  { %4326 = vmatprep.subr.bf16.mxu0 %v5858_v27 }
 0x248   :  { %4081 = vmatpush1.bf16.msra.mxu1 %v5853_v28 }
 0x249   :  { %4327 = vmatpush1.bf16.msra.mxu0 %v5856_v48  ;;  %4082 = vmatprep.subr.bf16.mxu1 %v5861_v29 }
 0x24a   :  { %4328 = vmatprep.subr.bf16.mxu0 %v5864_v30 }
 0x24c   :  { %4083 = vmatpush1.bf16.msra.mxu1 %v5859_v26 }
 0x24d   :  { %4329 = vmatpush1.bf16.msra.mxu0 %v5862_v31  ;;  %4084 = vmatprep.subr.bf16.mxu1 %v5867_v32 }
 0x24e   :  { %4330 = vmatprep.subr.bf16.mxu0 %v5870_v35 }
 0x250   :  { %4085 = vmatpush1.bf16.msra.mxu1 %v5865_v36 }
 0x251   :  { %4331 = vmatpush1.bf16.msra.mxu0 %v5868_v56  ;;  %4086 = vmatprep.subr.bf16.mxu1 %v5873_v37 }
 0x252   :  { %4332 = vmatprep.subr.bf16.mxu0 %v5876_v38 }
 0x254   :  { %4087 = vmatpush1.bf16.msra.mxu1 %v5871_v39 }
 0x255   :  { %4333 = vmatpush1.bf16.msra.mxu0 %v5874_v40  ;;  %4088 = vmatprep.subr.bf16.mxu1 %v5879_v41 }
 0x256   :  { %4334 = vmatprep.subr.bf16.mxu0 %v5882_v47 }
 0x258   :  { %4089 = vmatpush1.bf16.msra.mxu1 %v5877_v44 }
 0x259   :  { %4335 = vmatpush1.bf16.msra.mxu0 %v5880_v45  ;;  %4090 = vmatprep.subr.bf16.mxu1 %v5885_v62 }
 0x25a   :  { %4336 = vmatprep.subr.bf16.mxu0 %v5888_v46 }
 0x25c   :  { %4091 = vmatpush1.bf16.msra.mxu1 %v5883_v14 }
 0x25d   :  { %4337 = vmatpush1.bf16.msra.mxu0 %v5886_v50  ;;  %4092 = vmatprep.subr.bf16.mxu1 %v5891_v51 }
 0x25e   :  { %4338 = vmatprep.subr.bf16.mxu0 %v5894_v52 }
 0x260   :  { %4093 = vmatpush1.bf16.msra.mxu1 %v5889_v53 }
 0x261   :  { %4339 = vmatpush1.bf16.msra.mxu0 %v5892_v4  ;;  %4094 = vmatprep.subr.bf16.mxu1 %v5897_v55 }
 0x262   :  { %4340 = vmatprep.subr.bf16.mxu0 %v5900_v57 }
 0x264   :  { %4095 = vmatpush1.bf16.msra.mxu1 %v5895_v58 }
 0x265   :  { %4341 = vmatpush1.bf16.msra.mxu0 %v5898_v59  ;;  %4096 = vmatprep.subr.bf16.mxu1 %v5903_v0 }
 0x266   :  { %4342 = vmatprep.subr.bf16.mxu0 %v5906_v1 }
 0x268   :  { %4097 = vmatpush1.bf16.msra.mxu1 %v5901_v2 }
 0x269   :  { %4343 = vmatpush1.bf16.msra.mxu0 %v5904_v3  ;;  %4098 = vmatprep.subr.bf16.mxu1 %v5909_v5 }
 0x26a   :  { %4344 = vmatprep.subr.bf16.mxu0 %v5912_v33 }
 0x26c   :  { %4099 = vmatpush1.bf16.msra.mxu1 %v5907_v6 }
 0x26d   :  { %4345 = vmatpush1.bf16.msra.mxu0 %v5910_v34  ;;  %4100 = vmatprep.subr.bf16.mxu1 %v5915_v7 }
 0x26e   :  { %4346 = vmatprep.subr.bf16.mxu0 %v5918_v8 }
 0x270   :  { %4101 = vmatpush1.bf16.msra.mxu1 %v5913_v9 }
 0x271   :  { %4347 = vmatpush1.bf16.msra.mxu0 %v5916_v10  ;;  %4102 = vmatprep.subr.bf16.mxu1 %v5921_v11 }
 0x272   :  { %4348 = vmatprep.subr.bf16.mxu0 %v5924_v21 }
 0x274   :  { %4103 = vmatpush1.bf16.msra.mxu1 %v5919_v12 }
 0x275   :  { %4349 = vmatpush1.bf16.msra.mxu0 %v5922_v13 }
 0x277   :  { %4105 = vmatmul.mubr.bf16.vlgmr.msra.gmra.mrb[4].mxu1 %v6159_v63 }
 0x278   :  { %4351 = vmatmul.mubr.bf16.vlgmr.msra.gmra.mrb[4].mxu0 %v6159_v63 }
 0x34a   :  { %v4106_v20 = vpop.f32.mrb[4].mxu1 }
 0x34b   :  { %v4352_v25 = vpop.f32.mrb[4].mxu0  ;;  %v4991_v27 = vadd.f32 %v4106_v20, %v722_v18  ;;  %v4108_v28 = vpop.f32.mrb[5].mxu1 }
 0x34c   :  { %v4993_v63 = vadd.f32 %v4352_v25, %v730_v23  ;;  %v4354_v48 = vpop.f32.mrb[5].mxu0  ;;  %v4992_v29 = vadd.f32 %v4108_v28, %v726_v42  ;;  %v4110_v26 = vpop.f32.mrb[6].mxu1 }
 0x34d   :  { %v4994_v30 = vadd.f32 %v4354_v48, %v734_v24  ;;  %v4356_v31 = vpop.f32.mrb[6].mxu0  ;;  %v4111_v32 = vpop.f32.mrb[7].mxu1 }
 0x34e   :  { %v4357_v43 = vpop.f32.mrb[7].mxu0  ;;  %v4366_v35 = vcombine.low %v4991_v27, %v4992_v29 }
 0x34f   :  { %v4382_v36 = vcombine.low %v4993_v63, %v4994_v30 }
 0x350   :  { %v4380_v56 = vrot.slane %v4366_v35, %v6085_v49 }
 0x351   :  { %4986 = vst.sshfl [vmem:[#allocation8 + $0x8] sm:$0x33 pattern:$0x76325410] %v4382_v36 }
 0x352   :  { %v4381_v37 = vcombine.low %v4373_v54, %v4380_v56 }
 0x354   :  { %4392 = vst [vmem:[#allocation8] sm:$0xff] %v4381_v37 }
 0x355   :  { %6002 = shalt.err (!%p5999_p0)
}
 0x356   :  { %s6003_s25 = scalar_lea.hbm %s6227_s3, 192 }
 0x357   :  { %p6004_p1 = scmp.ne.s32.totalorder %s6227_s3, %s6003_s25  ;;  %p6007_p2 = scmp.lt.u32.totalorder %s6003_s25, %s6227_s3 }
 0x359   :  { %p6009_p3 = pnand %p6007_p2, %p6004_p1 }
 0x35b   :  { %6012 = shalt.err (!%p6009_p3)
}
 0x35c   :  { %4403 = dma.vmem_to_hbm [thread:$0]  %s4401_s21, 192, %s6227_s3, [#allocation4]  }
 0x35d   :  { %6017 = dma.done.wait [#allocation4], 192  }
 0x35e   :  { %6018 = vsyncadd [#allocation4], 4294967104 }
 0x35f   :  { %4407 = vsyncpa [#allocation3], 1 }
 0x360   :  { %4408 = vsyncpa [#allocation6], 1 }
 0x361   :  { %4409 = vsyncpa [#allocation4], 1 }

</bundles_post_ra>
